<compile_context>
chip_gen: v7x
topology: tpu7x:2x2x1
jax: 0.10.0
libtpu: 0.0.40
codegen_flags: <defaults>
</compile_context>

<pallas_src>
import math
from functools import partial

import jax
import jax.numpy as jnp
from jax import lax
from jax.experimental import pallas as pl
from jax.experimental.pallas import tpu as pltpu

_INV_SQRT2 = 1.0 / math.sqrt(2.0)
_GELU_C = math.sqrt(2.0 / math.pi)
_MIN_ROWS = 16  # bf16 sublane packing -> row tiles multiples of 16


def _round_up(a, b):
    return ((a + b - 1) // b) * b


def _ffn_kernel(x_ref, w1_ref, b1_ref, w2_ref, b2_ref, gamma_ref, o_ref):
    # x_ref: (tm, D) bf16, w1: (D, H) bf16, b1: (1, H) f32,
    # w2: (H, D) bf16, b2: (1, D) f32, gamma: (1, D) f32, o_ref: (tm, D) f32.

    # Linear 1: bf16 operands, f32 accumulation; bias add in f32.
    h = jnp.dot(x_ref[...], w1_ref[...], preferred_element_type=jnp.float32) + b1_ref[...]

    # tanh-approximate GELU: tanh runs on the EUP slot; only a handful of VALU mul/adds remain.
    h = 0.5 * h * (1.0 + jnp.tanh(_GELU_C * (h + 0.044715 * (h * h * h))))

    # Linear 2: bf16 operands, f32 accumulation.
    y = jnp.dot(h.astype(jnp.bfloat16), w2_ref[...],
                preferred_element_type=jnp.float32) + b2_ref[...]

    # Dropout(p=0.1): identity at inference time (eval-mode semantics).

    # LayerNorm over features, eps=1e-5, weight=gamma, bias=None (all f32).
    mean = jnp.mean(y, axis=-1, keepdims=True)
    centered = y - mean
    var = jnp.mean(centered * centered, axis=-1, keepdims=True)
    o_ref[...] = (centered * lax.rsqrt(var + 1e-5) * gamma_ref[...]).astype(o_ref.dtype)


@partial(jax.jit, static_argnames=("tm",))
def feed_forward(x, w1, b1, w2, b2, gamma, *, tm=512):
    """x: (B, T, D) float32. Returns (B, T, D) float32."""
    B, T, D = x.shape
    H = w1.shape[1]
    M = B * T

    # Effective row tile: as large as requested, but (a) 16-aligned for bf16 sublanes,
    # (b) clamped so the row grid keeps >=4 steps for medium M (v7x megacore sharding),
    # (c) never larger than the (padded) row count for tiny inputs.
    target_steps = 4
    tm_cap = _round_up(pl.cdiv(M, target_steps), _MIN_ROWS)
    tm_eff = max(_MIN_ROWS, min(_round_up(tm, _MIN_ROWS), tm_cap))
    if M % tm_eff != 0:
        # Prefer a slightly smaller tile that divides M exactly over padding
        # (the pad materializes a full extra HBM copy of the activations).
        for cand in range(tm_eff, max(_MIN_ROWS, tm_eff // 2) - 1, -_MIN_ROWS):
            if M % cand == 0:
                tm_eff = cand
                break
    M_pad = _round_up(M, tm_eff)

    # bf16 x: halves the dominant HBM input stream and removes a per-tile cast pass in the kernel.
    x2 = x.reshape(M, D).astype(jnp.bfloat16)
    if M_pad != M:
        x2 = jnp.pad(x2, ((0, M_pad - M), (0, 0)))

    # bf16 weights: halves weight DMA / VMEM residency; f32 accumulation keeps accuracy.
    w1b = w1.astype(jnp.bfloat16)
    w2b = w2.astype(jnp.bfloat16)

    # Constant-index (resident) blocks: single-buffer them, double-buffering buys nothing.
    const_kw = dict(pipeline_mode=pl.Buffered(buffer_count=1))

    cost = pl.CostEstimate(
        flops=4 * M_pad * D * H,                 # two (M,D,H)-shaped matmuls, 2*M*D*H flops each
        transcendentals=M_pad * H,               # one tanh per hidden activation
        bytes_accessed=(M_pad * D * 2)           # x (bf16)
                       + (M_pad * D * 4)         # out (f32)
                       + 2 * (D * H * 2)         # w1 + w2 (bf16)
                       + (H + 2 * D) * 4,        # b1, b2, gamma (f32)
    )

    out = pl.pallas_call(
        _ffn_kernel,
        out_shape=jax.ShapeDtypeStruct((M_pad, D), jnp.float32),
        grid_spec=pltpu.PrefetchScalarGridSpec(
            num_scalar_prefetch=0,
            grid=(M_pad // tm_eff,),                                   # row axis -> megacore parallel
            in_specs=[
                pl.BlockSpec((tm_eff, D), lambda i: (i, 0)),           # x row tile (bf16)
                pl.BlockSpec((D, H), lambda i: (0, 0), **const_kw),    # w1 resident (bf16)
                pl.BlockSpec((1, H), lambda i: (0, 0), **const_kw),    # b1 (f32)
                pl.BlockSpec((H, D), lambda i: (0, 0), **const_kw),    # w2 resident (bf16)
                pl.BlockSpec((1, D), lambda i: (0, 0), **const_kw),    # b2 (f32)
                pl.BlockSpec((1, D), lambda i: (0, 0), **const_kw),    # layernorm gamma (f32)
            ],
            out_specs=pl.BlockSpec((tm_eff, D), lambda i: (i, 0)),
        ),
        compiler_params=pltpu.CompilerParams(
            dimension_semantics=("parallel",),
            vmem_limit_bytes=32 * 1024 * 1024,
        ),
        cost_estimate=cost,
    )(x2, w1b, b1, w2b, b2, gamma)

    return out[:M].reshape(B, T, D)


def init_params(key, n_embd):
    """Deterministic init mimicking torch.nn.Linear defaults (uniform +-1/sqrt(fan_in))."""
    hidden = 4 * n_embd
    k1, k2, k3, k4 = jax.random.split(key, 4)
    bound1 = 1.0 / math.sqrt(n_embd)
    bound2 = 1.0 / math.sqrt(hidden)
    # Stored transposed relative to torch (in_features, out_features) so the kernel does x @ W.
    w1 = jax.random.uniform(k1, (n_embd, hidden), jnp.float32, -bound1, bound1)
    b1 = jax.random.uniform(k2, (1, hidden), jnp.float32, -bound1, bound1)
    w2 = jax.random.uniform(k3, (hidden, n_embd), jnp.float32, -bound2, bound2)
    b2 = jax.random.uniform(k4, (1, n_embd), jnp.float32, -bound2, bound2)
    gamma = jnp.ones((1, n_embd), jnp.float32)  # LayerNorm weight, bias=False
    return w1, b1, w2, b2, gamma


def _reference_f32(x, w1, b1, w2, b2, gamma):
    """Exact-erf, full-f32 reference matching the PyTorch module's math."""
    h = jnp.dot(x, w1, precision=lax.Precision.HIGHEST) + b1
    h = 0.5 * h * (1.0 + lax.erf(h * _INV_SQRT2))
    y = jnp.dot(h, w2, precision=lax.Precision.HIGHEST) + b2
    mean = jnp.mean(y, axis=-1, keepdims=True)
    var = jnp.mean((y - mean) ** 2, axis=-1, keepdims=True)
    return (y - mean) * lax.rsqrt(var + 1e-5) * gamma


def _reference_mixed(x, w1, b1, w2, b2, gamma):
    """Pure-JAX reference at the kernel's precision: bf16 operands / f32 accum, tanh GELU."""
    h = jnp.dot(x.astype(jnp.bfloat16), w1.astype(jnp.bfloat16),
                preferred_element_type=jnp.float32) + b1
    h = 0.5 * h * (1.0 + jnp.tanh(_GELU_C * (h + 0.044715 * (h * h * h))))
    y = jnp.dot(h.astype(jnp.bfloat16), w2.astype(jnp.bfloat16),
                preferred_element_type=jnp.float32) + b2
    mean = jnp.mean(y, axis=-1, keepdims=True)
    var = jnp.mean((y - mean) ** 2, axis=-1, keepdims=True)
    return (y - mean) * lax.rsqrt(var + 1e-5) * gamma


if __name__ == "__main__":
    n_embd = 384      # matches the PyTorch module's n_embd (384 = 3 * 128, lane-aligned)
    batch, seq = 2, 8

    key = jax.random.PRNGKey(0)
    kx, kp = jax.random.split(key)
    x = jax.random.normal(kx, (batch, seq, n_embd), jnp.float32)
    w1, b1, w2, b2, gamma = init_params(kp, n_embd)

    out = jax.block_until_ready(feed_forward(x, w1, b1, w2, b2, gamma))
    assert out.shape == (batch, seq, n_embd)

    # Check 1: against the exact-erf, full-f32 reference (the PyTorch module's math).
    # Tolerance covers bf16 matmul operands + tanh-GELU approximation.
    ref_f32 = _reference_f32(x, w1, b1, w2, b2, gamma)
    err_f32 = float(jnp.max(jnp.abs(out - ref_f32)))
    assert jnp.allclose(out, ref_f32, atol=5e-2, rtol=5e-2), \
        f"mismatch vs exact f32 reference (max abs err={err_f32})"

    # Check 2: against a reference using the same mixed precision (should match tightly).
    ref_mx = _reference_mixed(x, w1, b1, w2, b2, gamma)
    err_mx = float(jnp.max(jnp.abs(out - ref_mx)))
    assert jnp.allclose(out, ref_mx, atol=5e-3, rtol=5e-3), \
        f"mismatch vs mixed-precision reference (max abs err={err_mx})"

    print("KERNEL_OK")
</pallas_src>

<mosaic_0001>
module attributes {stable_mosaic.version = 11 : i64} {
  func.func @_ffn_kernel(%arg0: i32, %arg1: memref<16x384xbf16, #tpu.memory_space<vmem>>, %arg2: memref<384x1536xbf16, #tpu.memory_space<vmem>>, %arg3: memref<1x1536xf32, #tpu.memory_space<vmem>>, %arg4: memref<1536x384xbf16, #tpu.memory_space<vmem>>, %arg5: memref<1x384xf32, #tpu.memory_space<vmem>>, %arg6: memref<1x384xf32, #tpu.memory_space<vmem>>, %arg7: memref<16x384xf32, #tpu.memory_space<vmem>>) attributes {dimension_semantics = [#tpu.dimension_semantics<parallel>], iteration_bounds = array<i64: 1>, scalar_prefetch = 0 : i64, scratch_operands = 0 : i64, tpu.core_type = #tpu.core_type<tc>, window_params = [{transform_indices = @transform_0, window_bounds = array<i64: 16, 384>}, {pipeline_mode = #tpu.pipeline_mode<synchronous>, transform_indices = @transform_1, window_bounds = array<i64: 384, 1536>}, {pipeline_mode = #tpu.pipeline_mode<synchronous>, transform_indices = @transform_2, window_bounds = array<i64: 1, 1536>}, {pipeline_mode = #tpu.pipeline_mode<synchronous>, transform_indices = @transform_3, window_bounds = array<i64: 1536, 384>}, {pipeline_mode = #tpu.pipeline_mode<synchronous>, transform_indices = @transform_4, window_bounds = array<i64: 1, 384>}, {pipeline_mode = #tpu.pipeline_mode<synchronous>, transform_indices = @transform_5, window_bounds = array<i64: 1, 384>}, {transform_indices = @transform_6, window_bounds = array<i64: 16, 384>}]} {
    %c0 = arith.constant 0 : index
    %c0_0 = arith.constant 0 : index
    %0 = vector.load %arg1[%c0, %c0_0] : memref<16x384xbf16, #tpu.memory_space<vmem>>, vector<16x384xbf16>
    %c0_1 = arith.constant 0 : index
    %c0_2 = arith.constant 0 : index
    %1 = vector.load %arg2[%c0_1, %c0_2] : memref<384x1536xbf16, #tpu.memory_space<vmem>>, vector<384x1536xbf16>
    %cst = arith.constant dense<0.000000e+00> : vector<16x1536xf32>
    %2 = tpu.matmul %0, %1, %cst {dimension_numbers = #tpu.dot_dimension_numbers<[1], [0], [0], [1], [0, 0, 1, 1], [], []>} : vector<16x384xbf16>, vector<384x1536xbf16>, vector<16x1536xf32> -> vector<16x1536xf32>
    %c0_3 = arith.constant 0 : index
    %c0_4 = arith.constant 0 : index
    %3 = vector.load %arg3[%c0_3, %c0_4] : memref<1x1536xf32, #tpu.memory_space<vmem>>, vector<1x1536xf32>
    %4 = vector.broadcast %3 : vector<1x1536xf32> to vector<16x1536xf32>
    %5 = arith.addf %2, %4 : vector<16x1536xf32>
    %cst_5 = arith.constant 5.000000e-01 : f32
    %6 = vector.broadcast %cst_5 : f32 to vector<16x1536xf32>
    %7 = arith.mulf %6, %5 : vector<16x1536xf32>
    %8 = arith.mulf %5, %5 : vector<16x1536xf32>
    %9 = arith.mulf %8, %5 : vector<16x1536xf32>
    %cst_6 = arith.constant 4.471500e-02 : f32
    %10 = vector.broadcast %cst_6 : f32 to vector<16x1536xf32>
    %11 = arith.mulf %10, %9 : vector<16x1536xf32>
    %12 = arith.addf %5, %11 : vector<16x1536xf32>
    %cst_7 = arith.constant 0.797884583 : f32
    %13 = vector.broadcast %cst_7 : f32 to vector<16x1536xf32>
    %14 = arith.mulf %13, %12 : vector<16x1536xf32>
    %15 = math.tanh %14 : vector<16x1536xf32>
    %cst_8 = arith.constant 1.000000e+00 : f32
    %16 = vector.broadcast %cst_8 : f32 to vector<16x1536xf32>
    %17 = arith.addf %16, %15 : vector<16x1536xf32>
    %18 = arith.mulf %7, %17 : vector<16x1536xf32>
    %19 = arith.truncf %18 : vector<16x1536xf32> to vector<16x1536xbf16>
    %c0_9 = arith.constant 0 : index
    %c0_10 = arith.constant 0 : index
    %20 = vector.load %arg4[%c0_9, %c0_10] : memref<1536x384xbf16, #tpu.memory_space<vmem>>, vector<1536x384xbf16>
    %cst_11 = arith.constant dense<0.000000e+00> : vector<16x384xf32>
    %21 = tpu.matmul %19, %20, %cst_11 {dimension_numbers = #tpu.dot_dimension_numbers<[1], [0], [0], [1], [0, 0, 1, 1], [], []>} : vector<16x1536xbf16>, vector<1536x384xbf16>, vector<16x384xf32> -> vector<16x384xf32>
    %c0_12 = arith.constant 0 : index
    %c0_13 = arith.constant 0 : index
    %22 = vector.load %arg5[%c0_12, %c0_13] : memref<1x384xf32, #tpu.memory_space<vmem>>, vector<1x384xf32>
    %23 = vector.broadcast %22 : vector<1x384xf32> to vector<16x384xf32>
    %24 = arith.addf %21, %23 : vector<16x384xf32>
    %cst_14 = arith.constant dense<0.000000e+00> : vector<16xf32>
    %25 = vector.multi_reduction <add>, %24, %cst_14 [1] : vector<16x384xf32> to vector<16xf32>
    %26 = vector.shape_cast %25 : vector<16xf32> to vector<16x1xf32>
    %cst_15 = arith.constant 3.840000e+02 : f32
    %27 = vector.broadcast %cst_15 : f32 to vector<16x1xf32>
    %28 = arith.divf %26, %27 : vector<16x1xf32>
    %29 = vector.broadcast %28 : vector<16x1xf32> to vector<16x384xf32>
    %30 = arith.subf %24, %29 : vector<16x384xf32>
    %31 = arith.mulf %30, %30 : vector<16x384xf32>
    %cst_16 = arith.constant dense<0.000000e+00> : vector<16xf32>
    %32 = vector.multi_reduction <add>, %31, %cst_16 [1] : vector<16x384xf32> to vector<16xf32>
    %33 = vector.shape_cast %32 : vector<16xf32> to vector<16x1xf32>
    %cst_17 = arith.constant 3.840000e+02 : f32
    %34 = vector.broadcast %cst_17 : f32 to vector<16x1xf32>
    %35 = arith.divf %33, %34 : vector<16x1xf32>
    %cst_18 = arith.constant 9.99999974E-6 : f32
    %36 = vector.broadcast %cst_18 : f32 to vector<16x1xf32>
    %37 = arith.addf %35, %36 : vector<16x1xf32>
    %38 = math.rsqrt %37 : vector<16x1xf32>
    %39 = vector.broadcast %38 : vector<16x1xf32> to vector<16x384xf32>
    %40 = arith.mulf %30, %39 : vector<16x384xf32>
    %c0_19 = arith.constant 0 : index
    %c0_20 = arith.constant 0 : index
    %41 = vector.load %arg6[%c0_19, %c0_20] : memref<1x384xf32, #tpu.memory_space<vmem>>, vector<1x384xf32>
    %42 = vector.broadcast %41 : vector<1x384xf32> to vector<16x384xf32>
    %43 = arith.mulf %40, %42 : vector<16x384xf32>
    %c0_21 = arith.constant 0 : index
    %c0_22 = arith.constant 0 : index
    %44 = vector.load %arg7[%c0_21, %c0_22] : memref<16x384xf32, #tpu.memory_space<vmem>>, vector<16x384xf32>
    tpu.vector_store %arg7[%c0_21, %c0_22], %43 {strides = array<i32>} : memref<16x384xf32, #tpu.memory_space<vmem>>, vector<16x384xf32>,
    return
  }
  func.func @transform_0(%arg0: i32) -> (i32, i32) {
    %c0_i32 = arith.constant 0 : i32
    %c0_i32_0 = arith.constant 0 : i32
    return %arg0, %c0_i32 : i32, i32
  }
  func.func @transform_1(%arg0: i32) -> (i32, i32) {
    %c0_i32 = arith.constant 0 : i32
    %c0_i32_0 = arith.constant 0 : i32
    %c0_i32_1 = arith.constant 0 : i32
    return %c0_i32, %c0_i32_0 : i32, i32
  }
  func.func @transform_2(%arg0: i32) -> (i32, i32) {
    %c0_i32 = arith.constant 0 : i32
    %c0_i32_0 = arith.constant 0 : i32
    %c0_i32_1 = arith.constant 0 : i32
    return %c0_i32, %c0_i32_0 : i32, i32
  }
  func.func @transform_3(%arg0: i32) -> (i32, i32) {
    %c0_i32 = arith.constant 0 : i32
    %c0_i32_0 = arith.constant 0 : i32
    %c0_i32_1 = arith.constant 0 : i32
    return %c0_i32, %c0_i32_0 : i32, i32
  }
  func.func @transform_4(%arg0: i32) -> (i32, i32) {
    %c0_i32 = arith.constant 0 : i32
    %c0_i32_0 = arith.constant 0 : i32
    %c0_i32_1 = arith.constant 0 : i32
    return %c0_i32, %c0_i32_0 : i32, i32
  }
  func.func @transform_5(%arg0: i32) -> (i32, i32) {
    %c0_i32 = arith.constant 0 : i32
    %c0_i32_0 = arith.constant 0 : i32
    %c0_i32_1 = arith.constant 0 : i32
    return %c0_i32, %c0_i32_0 : i32, i32
  }
  func.func @transform_6(%arg0: i32) -> (i32, i32) {
    %c0_i32 = arith.constant 0 : i32
    %c0_i32_0 = arith.constant 0 : i32
    return %arg0, %c0_i32 : i32, i32
  }
}

</mosaic_0001>

<bundles_post_ra>
// kernel: feed_forward.1
= control target key start
LH: loop header
LB: loop body
LE: loop exit
PB: predicated region body
PF: predicated region fallthrough
CT: control target
= control target key end

     0   :  { %v6797_v63 = vmov 0   ;;  %s8861_s0 = inlined_call_operand.vmem [shape: bf16[16,384], index: 0, kind: input, shape index: {}]   ;;  %s8862_s1 = inlined_call_operand.vmem [shape: bf16[384,1536], index: 1, kind: input, shape index: {}]   ;;  %s8863_s2 = inlined_call_operand.vmem [shape: f32[1,1536], index: 2, kind: input, shape index: {}]   ;;  %s8864_s3 = inlined_call_operand.vmem [shape: bf16[1536,384], index: 3, kind: input, shape index: {}]   ;;  %s8865_s4 = inlined_call_operand.vmem [shape: f32[1,384], index: 4, kind: input, shape index: {}]   ;;  %s8866_s5 = inlined_call_operand.vmem [shape: f32[1,384], index: 5, kind: input, shape index: {}]   ;;  %s8867_s6 = inlined_call_operand.hbm [shape: f32[16,384], index: 6, kind: output, shape index: {}]  }
   0x1   :  { %v5897_v0 = vld [vmem:[%s8862_s1 + $0x4] ss:$48 sps:$4 sm:$0xff]   ;;  %v5899_v1 = vld [vmem:[%s8862_s1] ss:$48 sps:$4 sm:$0xff]  }
   0x2   :  { %1837 = vmatprep.subr.bf16.mxu1 %v5897_v0  ;;  %v5900_v2 = vld [vmem:[%s8862_s1 + $0x64] ss:$48 sps:$4 sm:$0xff]   ;;  %v5902_v3 = vld [vmem:[%s8862_s1 + $0x60] ss:$48 sps:$4 sm:$0xff]  }
   0x3   :  { %1838 = vmatpush1.bf16.msra.mxu1 %v5899_v1  ;;  %v5903_v4 = vld [vmem:[%s8862_s1 + $0xc4] ss:$48 sps:$4 sm:$0xff]   ;;  %v5905_v5 = vld [vmem:[%s8862_s1 + $0xc0] ss:$48 sps:$4 sm:$0xff]  }
   0x4   :  { %1839 = vmatprep.subr.bf16.mxu1 %v5900_v2  ;;  %v5906_v6 = vld [vmem:[%s8862_s1 + $0x124] ss:$48 sps:$4 sm:$0xff]   ;;  %v5908_v7 = vld [vmem:[%s8862_s1 + $0x120] ss:$48 sps:$4 sm:$0xff]  }
   0x5   :  { %v5909_v8 = vld [vmem:[%s8862_s1 + $0x184] ss:$48 sps:$4 sm:$0xff]   ;;  %v5911_v9 = vld [vmem:[%s8862_s1 + $0x180] ss:$48 sps:$4 sm:$0xff]  }
   0x6   :  { %v5912_v10 = vld [vmem:[%s8862_s1 + $0x1e4] ss:$48 sps:$4 sm:$0xff]   ;;  %v5914_v11 = vld [vmem:[%s8862_s1 + $0x1e0] ss:$48 sps:$4 sm:$0xff]  }
   0x7   :  { %1840 = vmatpush1.bf16.msra.mxu1 %v5902_v3  ;;  %v5915_v12 = vld [vmem:[%s8862_s1 + $0x244] ss:$48 sps:$4 sm:$0xff]   ;;  %v5917_v13 = vld [vmem:[%s8862_s1 + $0x240] ss:$48 sps:$4 sm:$0xff]  }
   0x8   :  { %1841 = vmatprep.subr.bf16.mxu1 %v5903_v4  ;;  %v5945_v14 = vld [vmem:[%s8862_s1 + $0x14] ss:$48 sps:$4 sm:$0xff]   ;;  %v5947_v15 = vld [vmem:[%s8862_s1 + $0x10] ss:$48 sps:$4 sm:$0xff]  }
   0x9   :  { %v6887_v16 = vld [vmem:[%s8861_s0 + $0x4] ss:$12 sps:$4 sm:$0xff]   ;;  %2009 = vmatprep.subr.bf16.mxu0 %v5945_v14  ;;  %v7008_v55 = vld [vmem:[%s8861_s0] ss:$12 sps:$4 sm:$0xff]  }
   0xa   :  { %v5918_v17 = vld [vmem:[%s8862_s1 + $0x2a4] ss:$48 sps:$4 sm:$0xff]   ;;  %2010 = vmatpush1.bf16.msra.mxu0 %v5947_v15  ;;  %1869 = vmatprep.mubr.bf16.mxu1 %v6887_v16  ;;  %v5956_v19 = vld [vmem:[%s8862_s1 + $0x70] ss:$48 sps:$4 sm:$0xff]  }
   0xb   :  { %1842 = vmatpush1.bf16.msra.mxu1 %v5905_v5  ;;  %v5954_v18 = vld [vmem:[%s8862_s1 + $0x74] ss:$48 sps:$4 sm:$0xff]   ;;  %2041 = vmatprep.mubr.bf16.mxu0 %v6887_v16  ;;  %v5920_v20 = vld [vmem:[%s8862_s1 + $0x2a0] ss:$48 sps:$4 sm:$0xff]  }
   0xc   :  { %1843 = vmatprep.subr.bf16.mxu1 %v5906_v6  ;;  %v5921_v21 = vld [vmem:[%s8862_s1 + $0x304] ss:$48 sps:$4 sm:$0xff]   ;;  %2011 = vmatprep.subr.bf16.mxu0 %v5954_v18  ;;  %v5962_v23 = vld [vmem:[%s8862_s1 + $0xd0] ss:$48 sps:$4 sm:$0xff]  }
   0xd   :  { %v5960_v22 = vld [vmem:[%s8862_s1 + $0xd4] ss:$48 sps:$4 sm:$0xff]   ;;  %v5923_v24 = vld [vmem:[%s8862_s1 + $0x300] ss:$48 sps:$4 sm:$0xff]  }
   0xe   :  { %2012 = vmatpush1.bf16.msra.mxu0 %v5956_v19  ;;  %v5966_v25 = vld [vmem:[%s8862_s1 + $0x134] ss:$48 sps:$4 sm:$0xff]   ;;  %v5968_v27 = vld [vmem:[%s8862_s1 + $0x130] ss:$48 sps:$4 sm:$0xff]  }
   0xf   :  { %1844 = vmatpush1.bf16.msra.mxu1 %v5908_v7  ;;  %2013 = vmatprep.subr.bf16.mxu0 %v5960_v22  ;;  %v5924_v26 = vld [vmem:[%s8862_s1 + $0x364] ss:$48 sps:$4 sm:$0xff]   ;;  %v5926_v29 = vld [vmem:[%s8862_s1 + $0x360] ss:$48 sps:$4 sm:$0xff]  }
  0x10   :  { %1845 = vmatprep.subr.bf16.mxu1 %v5909_v8  ;;  %v5972_v28 = vld [vmem:[%s8862_s1 + $0x194] ss:$48 sps:$4 sm:$0xff]   ;;  %v5974_v31 = vld [vmem:[%s8862_s1 + $0x190] ss:$48 sps:$4 sm:$0xff]  }
  0x11   :  { %v5927_v30 = vld [vmem:[%s8862_s1 + $0x3c4] ss:$48 sps:$4 sm:$0xff]   ;;  %v5929_v33 = vld [vmem:[%s8862_s1 + $0x3c0] ss:$48 sps:$4 sm:$0xff]  }
  0x12   :  { %2014 = vmatpush1.bf16.msra.mxu0 %v5962_v23  ;;  %v5978_v32 = vld [vmem:[%s8862_s1 + $0x1f4] ss:$48 sps:$4 sm:$0xff]   ;;  %v5980_v35 = vld [vmem:[%s8862_s1 + $0x1f0] ss:$48 sps:$4 sm:$0xff]  }
  0x13   :  { %1846 = vmatpush1.bf16.msra.mxu1 %v5911_v9  ;;  %2015 = vmatprep.subr.bf16.mxu0 %v5966_v25  ;;  %v5930_v34 = vld [vmem:[%s8862_s1 + $0x424] ss:$48 sps:$4 sm:$0xff]   ;;  %v5932_v37 = vld [vmem:[%s8862_s1 + $0x420] ss:$48 sps:$4 sm:$0xff]  }
  0x14   :  { %1847 = vmatprep.subr.bf16.mxu1 %v5912_v10  ;;  %v5984_v36 = vld [vmem:[%s8862_s1 + $0x254] ss:$48 sps:$4 sm:$0xff]   ;;  %v5986_v39 = vld [vmem:[%s8862_s1 + $0x250] ss:$48 sps:$4 sm:$0xff]  }
  0x15   :  { %v5933_v38 = vld [vmem:[%s8862_s1 + $0x484] ss:$48 sps:$4 sm:$0xff]   ;;  %v5935_v41 = vld [vmem:[%s8862_s1 + $0x480] ss:$48 sps:$4 sm:$0xff]  }
  0x16   :  { %2016 = vmatpush1.bf16.msra.mxu0 %v5968_v27  ;;  %v5990_v40 = vld [vmem:[%s8862_s1 + $0x2b4] ss:$48 sps:$4 sm:$0xff]   ;;  %v5992_v43 = vld [vmem:[%s8862_s1 + $0x2b0] ss:$48 sps:$4 sm:$0xff]  }
  0x17   :  { %1848 = vmatpush1.bf16.msra.mxu1 %v5914_v11  ;;  %2017 = vmatprep.subr.bf16.mxu0 %v5972_v28  ;;  %v5936_v42 = vld [vmem:[%s8862_s1 + $0x4e4] ss:$48 sps:$4 sm:$0xff]   ;;  %v5938_v45 = vld [vmem:[%s8862_s1 + $0x4e0] ss:$48 sps:$4 sm:$0xff]  }
  0x18   :  { %1849 = vmatprep.subr.bf16.mxu1 %v5915_v12  ;;  %v5996_v44 = vld [vmem:[%s8862_s1 + $0x314] ss:$48 sps:$4 sm:$0xff]   ;;  %v5998_v47 = vld [vmem:[%s8862_s1 + $0x310] ss:$48 sps:$4 sm:$0xff]  }
  0x19   :  { %v5939_v46 = vld [vmem:[%s8862_s1 + $0x544] ss:$48 sps:$4 sm:$0xff]   ;;  %v5941_v49 = vld [vmem:[%s8862_s1 + $0x540] ss:$48 sps:$4 sm:$0xff]  }
  0x1a   :  { %2018 = vmatpush1.bf16.msra.mxu0 %v5974_v31  ;;  %v6003_v48 = vld [vmem:[%s8862_s1 + $0x374] ss:$48 sps:$4 sm:$0xff]   ;;  %v6005_v51 = vld [vmem:[%s8862_s1 + $0x370] ss:$48 sps:$4 sm:$0xff]  }
  0x1b   :  { %1850 = vmatpush1.bf16.msra.mxu1 %v5917_v13  ;;  %2019 = vmatprep.subr.bf16.mxu0 %v5978_v32  ;;  %v5942_v50 = vld [vmem:[%s8862_s1 + $0x5a4] ss:$48 sps:$4 sm:$0xff]   ;;  %v5944_v53 = vld [vmem:[%s8862_s1 + $0x5a0] ss:$48 sps:$4 sm:$0xff]  }
  0x1c   :  { %1851 = vmatprep.subr.bf16.mxu1 %v5918_v17  ;;  %v6009_v52 = vld [vmem:[%s8862_s1 + $0x3d4] ss:$48 sps:$4 sm:$0xff]   ;;  %v6011_v56 = vld [vmem:[%s8862_s1 + $0x3d0] ss:$48 sps:$4 sm:$0xff]  }
  0x1d   :  { %v5952_v54 = vld [vmem:[%s8862_s1 + $0x604] ss:$48 sps:$4 sm:$0xff]   ;;  %v5950_v58 = vld [vmem:[%s8862_s1 + $0x600] ss:$48 sps:$4 sm:$0xff]  }
  0x1e   :  { %2020 = vmatpush1.bf16.msra.mxu0 %v5980_v35  ;;  %v6015_v57 = vld [vmem:[%s8862_s1 + $0x434] ss:$48 sps:$4 sm:$0xff]   ;;  %v6017_v60 = vld [vmem:[%s8862_s1 + $0x430] ss:$48 sps:$4 sm:$0xff]  }
  0x1f   :  { %1852 = vmatpush1.bf16.msra.mxu1 %v5920_v20  ;;  %2021 = vmatprep.subr.bf16.mxu0 %v5984_v36  ;;  %v5959_v59 = vld [vmem:[%s8862_s1 + $0x664] ss:$48 sps:$4 sm:$0xff]   ;;  %v5957_v62 = vld [vmem:[%s8862_s1 + $0x660] ss:$48 sps:$4 sm:$0xff]  }
  0x20   :  { %1853 = vmatprep.subr.bf16.mxu1 %v5921_v21  ;;  %v6021_v61 = vld [vmem:[%s8862_s1 + $0x494] ss:$48 sps:$4 sm:$0xff]   ;;  %v6023_v1 = vld [vmem:[%s8862_s1 + $0x490] ss:$48 sps:$4 sm:$0xff]  }
  0x21   :  { %v5965_v0 = vld [vmem:[%s8862_s1 + $0x6c4] ss:$48 sps:$4 sm:$0xff]   ;;  %v5963_v3 = vld [vmem:[%s8862_s1 + $0x6c0] ss:$48 sps:$4 sm:$0xff]  }
  0x22   :  { %2022 = vmatpush1.bf16.msra.mxu0 %v5986_v39  ;;  %v6027_v2 = vld [vmem:[%s8862_s1 + $0x4f4] ss:$48 sps:$4 sm:$0xff]   ;;  %v6029_v5 = vld [vmem:[%s8862_s1 + $0x4f0] ss:$48 sps:$4 sm:$0xff]  }
  0x23   :  { %1854 = vmatpush1.bf16.msra.mxu1 %v5923_v24  ;;  %2023 = vmatprep.subr.bf16.mxu0 %v5990_v40  ;;  %v5971_v4 = vld [vmem:[%s8862_s1 + $0x724] ss:$48 sps:$4 sm:$0xff]   ;;  %v5969_v7 = vld [vmem:[%s8862_s1 + $0x720] ss:$48 sps:$4 sm:$0xff]  }
  0x24   :  { %1855 = vmatprep.subr.bf16.mxu1 %v5924_v26  ;;  %v6033_v6 = vld [vmem:[%s8862_s1 + $0x554] ss:$48 sps:$4 sm:$0xff]   ;;  %v6035_v9 = vld [vmem:[%s8862_s1 + $0x550] ss:$48 sps:$4 sm:$0xff]   ;;  %v6002_v26 = vld [vmem:[%s8862_s1 + $0xc] ss:$48 sps:$4 sm:$0xff]  }
  0x25   :  { %v5977_v8 = vld [vmem:[%s8862_s1 + $0x784] ss:$48 sps:$4 sm:$0xff]   ;;  %v5975_v11 = vld [vmem:[%s8862_s1 + $0x780] ss:$48 sps:$4 sm:$0xff]  }
  0x26   :  { %2024 = vmatpush1.bf16.msra.mxu0 %v5992_v43  ;;  %v6039_v10 = vld [vmem:[%s8862_s1 + $0x5b4] ss:$48 sps:$4 sm:$0xff]   ;;  %v6041_v13 = vld [vmem:[%s8862_s1 + $0x5b0] ss:$48 sps:$4 sm:$0xff]  }
  0x27   :  { %1856 = vmatpush1.bf16.msra.mxu1 %v5926_v29  ;;  %2025 = vmatprep.subr.bf16.mxu0 %v5996_v44  ;;  %v5983_v12 = vld [vmem:[%s8862_s1 + $0x7e4] ss:$48 sps:$4 sm:$0xff]   ;;  %v5981_v15 = vld [vmem:[%s8862_s1 + $0x7e0] ss:$48 sps:$4 sm:$0xff]   ;;  %v6000_v29 = vld [vmem:[%s8862_s1 + $0x8] ss:$48 sps:$4 sm:$0xff]  }
  0x28   :  { %1857 = vmatprep.subr.bf16.mxu1 %v5927_v30  ;;  %v6047_v14 = vld [vmem:[%s8862_s1 + $0x614] ss:$48 sps:$4 sm:$0xff]   ;;  %v6045_v18 = vld [vmem:[%s8862_s1 + $0x610] ss:$48 sps:$4 sm:$0xff]   ;;  %v6008_v30 = vld [vmem:[%s8862_s1 + $0x6c] ss:$48 sps:$4 sm:$0xff]  }
  0x29   :  { %v5989_v17 = vld [vmem:[%s8862_s1 + $0x844] ss:$48 sps:$4 sm:$0xff]   ;;  %v5987_v20 = vld [vmem:[%s8862_s1 + $0x840] ss:$48 sps:$4 sm:$0xff]  }
  0x2a   :  { %2026 = vmatpush1.bf16.msra.mxu0 %v5998_v47  ;;  %v6053_v19 = vld [vmem:[%s8862_s1 + $0x674] ss:$48 sps:$4 sm:$0xff]   ;;  %v6051_v22 = vld [vmem:[%s8862_s1 + $0x670] ss:$48 sps:$4 sm:$0xff]  }
  0x2b   :  { %1858 = vmatpush1.bf16.msra.mxu1 %v5929_v33  ;;  %2027 = vmatprep.subr.bf16.mxu0 %v6003_v48  ;;  %v5995_v21 = vld [vmem:[%s8862_s1 + $0x8a4] ss:$48 sps:$4 sm:$0xff]   ;;  %v5993_v24 = vld [vmem:[%s8862_s1 + $0x8a0] ss:$48 sps:$4 sm:$0xff]   ;;  %v6006_v33 = vld [vmem:[%s8862_s1 + $0x68] ss:$48 sps:$4 sm:$0xff]  }
  0x2c   :  { %1859 = vmatprep.subr.bf16.mxu1 %v5930_v34  ;;  %v6059_v23 = vld [vmem:[%s8862_s1 + $0x6d4] ss:$48 sps:$4 sm:$0xff]   ;;  %v6057_v27 = vld [vmem:[%s8862_s1 + $0x6d0] ss:$48 sps:$4 sm:$0xff]   ;;  %v6014_v34 = vld [vmem:[%s8862_s1 + $0xcc] ss:$48 sps:$4 sm:$0xff]  }
  0x2d   :  { %v7110_v25 = vld [vmem:[%s8861_s0 + $0x8] ss:$12 sps:$4 sm:$0xff]   ;;  %v6063_v31 = vld [vmem:[%s8862_s1 + $0x730] ss:$48 sps:$4 sm:$0xff]  }
  0x2e   :  { %2028 = vmatpush1.bf16.msra.mxu0 %v6005_v51  ;;  %v6065_v28 = vld [vmem:[%s8862_s1 + $0x734] ss:$48 sps:$4 sm:$0xff]   ;;  %v6069_v35 = vld [vmem:[%s8862_s1 + $0x790] ss:$48 sps:$4 sm:$0xff]  }
  0x2f   :  { %1860 = vmatpush1.bf16.msra.mxu1 %v5932_v37  ;;  %2029 = vmatprep.subr.bf16.mxu0 %v6009_v52  ;;  %v6071_v32 = vld [vmem:[%s8862_s1 + $0x794] ss:$48 sps:$4 sm:$0xff]   ;;  %v6012_v37 = vld [vmem:[%s8862_s1 + $0xc8] ss:$48 sps:$4 sm:$0xff]   ;;  %v6075_v39 = vld [vmem:[%s8862_s1 + $0x7f0] ss:$48 sps:$4 sm:$0xff]  }
  0x30   :  { %1861 = vmatprep.subr.bf16.mxu1 %v5933_v38  ;;  %v6077_v36 = vld [vmem:[%s8862_s1 + $0x7f4] ss:$48 sps:$4 sm:$0xff]   ;;  %v6020_v38 = vld [vmem:[%s8862_s1 + $0x12c] ss:$48 sps:$4 sm:$0xff]   ;;  %v6081_v43 = vld [vmem:[%s8862_s1 + $0x850] ss:$48 sps:$4 sm:$0xff]  }
  0x31   :  { %v6083_v40 = vld [vmem:[%s8862_s1 + $0x854] ss:$48 sps:$4 sm:$0xff]   ;;  %v6087_v47 = vld [vmem:[%s8862_s1 + $0x8b0] ss:$48 sps:$4 sm:$0xff]  }
  0x32   :  { %2030 = vmatpush1.bf16.msra.mxu0 %v6011_v56  ;;  %v6089_v44 = vld [vmem:[%s8862_s1 + $0x8b4] ss:$48 sps:$4 sm:$0xff]   ;;  %v6093_v51 = vld [vmem:[%s8862_s1 + $0x20] ss:$48 sps:$4 sm:$0xff]  }
  0x33   :  { %1862 = vmatpush1.bf16.msra.mxu1 %v5935_v41  ;;  %2031 = vmatprep.subr.bf16.mxu0 %v6015_v57  ;;  %v6018_v41 = vld [vmem:[%s8862_s1 + $0x128] ss:$48 sps:$4 sm:$0xff]   ;;  %v6095_v48 = vld [vmem:[%s8862_s1 + $0x24] ss:$48 sps:$4 sm:$0xff]   ;;  %v6099_v56 = vld [vmem:[%s8862_s1 + $0x80] ss:$48 sps:$4 sm:$0xff]  }
  0x34   :  { %1863 = vmatprep.subr.bf16.mxu1 %v5936_v42  ;;  %v6026_v42 = vld [vmem:[%s8862_s1 + $0x18c] ss:$48 sps:$4 sm:$0xff]   ;;  %v6101_v52 = vld [vmem:[%s8862_s1 + $0x84] ss:$48 sps:$4 sm:$0xff]  }
  0x35   :  { %v6107_v57 = vld [vmem:[%s8862_s1 + $0xe4] ss:$48 sps:$4 sm:$0xff]  }
  0x36   :  { %2032 = vmatpush1.bf16.msra.mxu0 %v6017_v60  ;;  %v6113_v60 = vld [vmem:[%s8862_s1 + $0x144] ss:$48 sps:$4 sm:$0xff]  }
  0x37   :  { %1864 = vmatpush1.bf16.msra.mxu1 %v5938_v45  ;;  %2033 = vmatprep.subr.bf16.mxu0 %v6021_v61  ;;  %v6024_v45 = vld [vmem:[%s8862_s1 + $0x188] ss:$48 sps:$4 sm:$0xff]  }
  0x38   :  { %1865 = vmatprep.subr.bf16.mxu1 %v5939_v46  ;;  %v6032_v46 = vld [vmem:[%s8862_s1 + $0x1ec] ss:$48 sps:$4 sm:$0xff]   ;;  %v6048_v61 = vld [vmem:[%s8862_s1 + $0x308] ss:$48 sps:$4 sm:$0xff]  }
  0x3a   :  { %2034 = vmatpush1.bf16.msra.mxu0 %v6023_v1  ;;  %v6119_v1 = vld [vmem:[%s8862_s1 + $0x1a4] ss:$48 sps:$4 sm:$0xff]  }
  0x3b   :  { %1866 = vmatpush1.bf16.msra.mxu1 %v5941_v49  ;;  %2035 = vmatprep.subr.bf16.mxu0 %v6027_v2  ;;  %v6030_v49 = vld [vmem:[%s8862_s1 + $0x1e8] ss:$48 sps:$4 sm:$0xff]  }
  0x3c   :  { %1867 = vmatprep.subr.bf16.mxu1 %v5942_v50  ;;  %v6038_v50 = vld [vmem:[%s8862_s1 + $0x24c] ss:$48 sps:$4 sm:$0xff]   ;;  %v6054_v2 = vld [vmem:[%s8862_s1 + $0x368] ss:$48 sps:$4 sm:$0xff]  }
  0x3e   :  { %2036 = vmatpush1.bf16.msra.mxu0 %v6029_v5  ;;  %v6125_v5 = vld [vmem:[%s8862_s1 + $0x204] ss:$48 sps:$4 sm:$0xff]  }
  0x3f   :  { %1868 = vmatpush1.bf16.msra.mxu1 %v5944_v53  ;;  %2037 = vmatprep.subr.bf16.mxu0 %v6033_v6  ;;  %v6036_v53 = vld [vmem:[%s8862_s1 + $0x248] ss:$48 sps:$4 sm:$0xff]  }
  0x40   :  { %1880 = vmatprep.subr.bf16.mxu1 %v5952_v54  ;;  %v6044_v54 = vld [vmem:[%s8862_s1 + $0x2ac] ss:$48 sps:$4 sm:$0xff]   ;;  %v6060_v6 = vld [vmem:[%s8862_s1 + $0x3c8] ss:$48 sps:$4 sm:$0xff]  }
  0x42   :  { %1870 = vmatmul.mubr.bf16.vlgmr.msra.gmra.mrb[0].mxu1 %v7008_v55  ;;  %2038 = vmatpush1.bf16.msra.mxu0 %v6035_v9  ;;  %v6131_v9 = vld [vmem:[%s8862_s1 + $0x264] ss:$48 sps:$4 sm:$0xff]  }
  0x43   :  { %1881 = vmatpush1.bf16.msra.mxu1 %v5950_v58  ;;  %1912 = vmatprep.mubr.bf16.mxu1 %v6797_v63  ;;  %v6042_v58 = vld [vmem:[%s8862_s1 + $0x2a8] ss:$48 sps:$4 sm:$0xff]  }
  0x44   :  { %1882 = vmatprep.subr.bf16.mxu1 %v5959_v59  ;;  %2039 = vmatprep.subr.bf16.mxu0 %v6039_v10  ;;  %v6050_v59 = vld [vmem:[%s8862_s1 + $0x30c] ss:$48 sps:$4 sm:$0xff]   ;;  %v6066_v10 = vld [vmem:[%s8862_s1 + $0x428] ss:$48 sps:$4 sm:$0xff]  }
  0x46   :  { %2040 = vmatpush1.bf16.msra.mxu0 %v6041_v13  ;;  %v6137_v13 = vld [vmem:[%s8862_s1 + $0x2c4] ss:$48 sps:$4 sm:$0xff]  }
  0x47   :  { %1883 = vmatpush1.bf16.msra.mxu1 %v5957_v62  ;;  %2052 = vmatprep.subr.bf16.mxu0 %v6047_v14  ;;  %v6056_v62 = vld [vmem:[%s8862_s1 + $0x36c] ss:$48 sps:$4 sm:$0xff]   ;;  %v6072_v14 = vld [vmem:[%s8862_s1 + $0x488] ss:$48 sps:$4 sm:$0xff]  }
  0x48   :  { %1884 = vmatprep.subr.bf16.mxu1 %v5965_v0  ;;  %v6111_v0 = vld [vmem:[%s8862_s1 + $0x140] ss:$48 sps:$4 sm:$0xff]  }
  0x49   :  { %2042 = vmatmul.mubr.bf16.vlgmr.msra.gmra.mrb[0].mxu0 %v7008_v55 }
  0x4a   :  { %2053 = vmatpush1.bf16.msra.mxu0 %v6045_v18  ;;  %2084 = vmatprep.mubr.bf16.mxu0 %v6797_v63  ;;  %v6143_v18 = vld [vmem:[%s8862_s1 + $0x324] ss:$48 sps:$4 sm:$0xff]  }
  0x4b   :  { %1885 = vmatpush1.bf16.msra.mxu1 %v5963_v3  ;;  %2054 = vmatprep.subr.bf16.mxu0 %v6053_v19  ;;  %v6062_v3 = vld [vmem:[%s8862_s1 + $0x3cc] ss:$48 sps:$4 sm:$0xff]   ;;  %v6078_v19 = vld [vmem:[%s8862_s1 + $0x4e8] ss:$48 sps:$4 sm:$0xff]  }
  0x4c   :  { %1886 = vmatprep.subr.bf16.mxu1 %v5971_v4  ;;  %v6117_v4 = vld [vmem:[%s8862_s1 + $0x1a0] ss:$48 sps:$4 sm:$0xff]  }
  0x4e   :  { %2055 = vmatpush1.bf16.msra.mxu0 %v6051_v22  ;;  %v6149_v22 = vld [vmem:[%s8862_s1 + $0x384] ss:$48 sps:$4 sm:$0xff]  }
  0x4f   :  { %1887 = vmatpush1.bf16.msra.mxu1 %v5969_v7  ;;  %2056 = vmatprep.subr.bf16.mxu0 %v6059_v23  ;;  %v6068_v7 = vld [vmem:[%s8862_s1 + $0x42c] ss:$48 sps:$4 sm:$0xff]   ;;  %v6084_v23 = vld [vmem:[%s8862_s1 + $0x548] ss:$48 sps:$4 sm:$0xff]  }
  0x50   :  { %1888 = vmatprep.subr.bf16.mxu1 %v5977_v8  ;;  %v6123_v8 = vld [vmem:[%s8862_s1 + $0x200] ss:$48 sps:$4 sm:$0xff]  }
  0x52   :  { %2057 = vmatpush1.bf16.msra.mxu0 %v6057_v27  ;;  %v6155_v27 = vld [vmem:[%s8862_s1 + $0x3e4] ss:$48 sps:$4 sm:$0xff]  }
  0x53   :  { %1889 = vmatpush1.bf16.msra.mxu1 %v5975_v11  ;;  %2058 = vmatprep.subr.bf16.mxu0 %v6065_v28  ;;  %v6074_v11 = vld [vmem:[%s8862_s1 + $0x48c] ss:$48 sps:$4 sm:$0xff]   ;;  %v6090_v28 = vld [vmem:[%s8862_s1 + $0x5a8] ss:$48 sps:$4 sm:$0xff]  }
  0x54   :  { %1890 = vmatprep.subr.bf16.mxu1 %v5983_v12  ;;  %v6129_v12 = vld [vmem:[%s8862_s1 + $0x260] ss:$48 sps:$4 sm:$0xff]  }
  0x56   :  { %2059 = vmatpush1.bf16.msra.mxu0 %v6063_v31  ;;  %v6161_v31 = vld [vmem:[%s8862_s1 + $0x444] ss:$48 sps:$4 sm:$0xff]  }
  0x57   :  { %1891 = vmatpush1.bf16.msra.mxu1 %v5981_v15  ;;  %2060 = vmatprep.subr.bf16.mxu0 %v6071_v32  ;;  %v6080_v15 = vld [vmem:[%s8862_s1 + $0x4ec] ss:$48 sps:$4 sm:$0xff]   ;;  %v6096_v32 = vld [vmem:[%s8862_s1 + $0x608] ss:$48 sps:$4 sm:$0xff]  }
  0x58   :  { %1892 = vmatprep.subr.bf16.mxu1 %v5989_v17  ;;  %v6135_v17 = vld [vmem:[%s8862_s1 + $0x2c0] ss:$48 sps:$4 sm:$0xff]  }
  0x5a   :  { %2061 = vmatpush1.bf16.msra.mxu0 %v6069_v35  ;;  %v6167_v35 = vld [vmem:[%s8862_s1 + $0x4a4] ss:$48 sps:$4 sm:$0xff]  }
  0x5b   :  { %1893 = vmatpush1.bf16.msra.mxu1 %v5987_v20  ;;  %2062 = vmatprep.subr.bf16.mxu0 %v6077_v36  ;;  %v6086_v20 = vld [vmem:[%s8862_s1 + $0x54c] ss:$48 sps:$4 sm:$0xff]   ;;  %v6102_v36 = vld [vmem:[%s8862_s1 + $0x668] ss:$48 sps:$4 sm:$0xff]  }
  0x5c   :  { %1894 = vmatprep.subr.bf16.mxu1 %v5995_v21  ;;  %v6141_v21 = vld [vmem:[%s8862_s1 + $0x320] ss:$48 sps:$4 sm:$0xff]  }
  0x5e   :  { %2063 = vmatpush1.bf16.msra.mxu0 %v6075_v39  ;;  %v6173_v39 = vld [vmem:[%s8862_s1 + $0x504] ss:$48 sps:$4 sm:$0xff]  }
  0x5f   :  { %1895 = vmatpush1.bf16.msra.mxu1 %v5993_v24  ;;  %2064 = vmatprep.subr.bf16.mxu0 %v6083_v40  ;;  %v6092_v24 = vld [vmem:[%s8862_s1 + $0x5ac] ss:$48 sps:$4 sm:$0xff]   ;;  %v6108_v40 = vld [vmem:[%s8862_s1 + $0x6c8] ss:$48 sps:$4 sm:$0xff]  }
  0x60   :  { %1923 = vmatprep.subr.bf16.mxu1 %v6002_v26  ;;  %v6147_v26 = vld [vmem:[%s8862_s1 + $0x380] ss:$48 sps:$4 sm:$0xff]  }
  0x62   :  { %1913 = vmatmul.mubr.bf16.vlgmr.msra.gmra.mrb[0].mxu1 %v7110_v25  ;;  %2065 = vmatpush1.bf16.msra.mxu0 %v6081_v43  ;;  %v6179_v43 = vld [vmem:[%s8862_s1 + $0x564] ss:$48 sps:$4 sm:$0xff]  }
  0x63   :  { %1924 = vmatpush1.bf16.msra.mxu1 %v6000_v29  ;;  %1955 = vmatprep.mubr.bf16.mxu1 %v6887_v16  ;;  %v6098_v29 = vld [vmem:[%s8862_s1 + $0x60c] ss:$48 sps:$4 sm:$0xff]  }
  0x64   :  { %1925 = vmatprep.subr.bf16.mxu1 %v6008_v30  ;;  %2066 = vmatprep.subr.bf16.mxu0 %v6089_v44  ;;  %v6153_v30 = vld [vmem:[%s8862_s1 + $0x3e0] ss:$48 sps:$4 sm:$0xff]   ;;  %v6114_v44 = vld [vmem:[%s8862_s1 + $0x728] ss:$48 sps:$4 sm:$0xff]  }
  0x66   :  { %2067 = vmatpush1.bf16.msra.mxu0 %v6087_v47  ;;  %v6185_v47 = vld [vmem:[%s8862_s1 + $0x5c4] ss:$48 sps:$4 sm:$0xff]  }
  0x67   :  { %1926 = vmatpush1.bf16.msra.mxu1 %v6006_v33  ;;  %2181 = vmatprep.subr.bf16.mxu0 %v6095_v48  ;;  %v6104_v33 = vld [vmem:[%s8862_s1 + $0x66c] ss:$48 sps:$4 sm:$0xff]   ;;  %v6120_v48 = vld [vmem:[%s8862_s1 + $0x788] ss:$48 sps:$4 sm:$0xff]  }
  0x68   :  { %1927 = vmatprep.subr.bf16.mxu1 %v6014_v34  ;;  %v6159_v34 = vld [vmem:[%s8862_s1 + $0x440] ss:$48 sps:$4 sm:$0xff]  }
  0x69   :  { %2085 = vmatmul.mubr.bf16.vlgmr.msra.gmra.mrb[0].mxu0 %v7110_v25 }
  0x6a   :  { %2182 = vmatpush1.bf16.msra.mxu0 %v6093_v51  ;;  %2213 = vmatprep.mubr.bf16.mxu0 %v6887_v16  ;;  %v6105_v16 = vld [vmem:[%s8862_s1 + $0xe0] ss:$48 sps:$4 sm:$0xff]   ;;  %v6191_v51 = vld [vmem:[%s8862_s1 + $0x624] ss:$48 sps:$4 sm:$0xff]  }
  0x6b   :  { %1928 = vmatpush1.bf16.msra.mxu1 %v6012_v37  ;;  %2183 = vmatprep.subr.bf16.mxu0 %v6101_v52  ;;  %v6110_v37 = vld [vmem:[%s8862_s1 + $0x6cc] ss:$48 sps:$4 sm:$0xff]   ;;  %v6126_v52 = vld [vmem:[%s8862_s1 + $0x7e8] ss:$48 sps:$4 sm:$0xff]  }
  0x6c   :  { %1929 = vmatprep.subr.bf16.mxu1 %v6020_v38  ;;  %v6165_v38 = vld [vmem:[%s8862_s1 + $0x4a0] ss:$48 sps:$4 sm:$0xff]  }
  0x6e   :  { %2184 = vmatpush1.bf16.msra.mxu0 %v6099_v56  ;;  %v6132_v56 = vld [vmem:[%s8862_s1 + $0x848] ss:$48 sps:$4 sm:$0xff]  }
  0x6f   :  { %1930 = vmatpush1.bf16.msra.mxu1 %v6018_v41  ;;  %2185 = vmatprep.subr.bf16.mxu0 %v6107_v57  ;;  %v6116_v41 = vld [vmem:[%s8862_s1 + $0x72c] ss:$48 sps:$4 sm:$0xff]   ;;  %v6197_v57 = vld [vmem:[%s8862_s1 + $0x684] ss:$48 sps:$4 sm:$0xff]  }
  0x70   :  { %1931 = vmatprep.subr.bf16.mxu1 %v6026_v42  ;;  %v6171_v42 = vld [vmem:[%s8862_s1 + $0x500] ss:$48 sps:$4 sm:$0xff]  }
  0x72   :  { %2186 = vmatpush1.bf16.msra.mxu0 %v6105_v16  ;;  %v6195_v16 = vld [vmem:[%s8862_s1 + $0x680] ss:$48 sps:$4 sm:$0xff]  }
  0x73   :  { %1932 = vmatpush1.bf16.msra.mxu1 %v6024_v45  ;;  %2187 = vmatprep.subr.bf16.mxu0 %v6113_v60  ;;  %v6122_v45 = vld [vmem:[%s8862_s1 + $0x78c] ss:$48 sps:$4 sm:$0xff]   ;;  %v6203_v60 = vld [vmem:[%s8862_s1 + $0x6e4] ss:$48 sps:$4 sm:$0xff]  }
  0x74   :  { %1933 = vmatprep.subr.bf16.mxu1 %v6032_v46  ;;  %v6177_v46 = vld [vmem:[%s8862_s1 + $0x560] ss:$48 sps:$4 sm:$0xff]  }
  0x76   :  { %2188 = vmatpush1.bf16.msra.mxu0 %v6111_v0  ;;  %v6209_v0 = vld [vmem:[%s8862_s1 + $0x744] ss:$48 sps:$4 sm:$0xff]  }
  0x77   :  { %1934 = vmatpush1.bf16.msra.mxu1 %v6030_v49  ;;  %2189 = vmatprep.subr.bf16.mxu0 %v6119_v1  ;;  %v6128_v49 = vld [vmem:[%s8862_s1 + $0x7ec] ss:$48 sps:$4 sm:$0xff]  }
  0x78   :  { %1935 = vmatprep.subr.bf16.mxu1 %v6038_v50  ;;  %v6183_v50 = vld [vmem:[%s8862_s1 + $0x5c0] ss:$48 sps:$4 sm:$0xff]   ;;  %v6152_v1 = vld [vmem:[%s8862_s1 + $0x7c] ss:$48 sps:$4 sm:$0xff]  }
  0x7a   :  { %2190 = vmatpush1.bf16.msra.mxu0 %v6117_v4  ;;  %v6215_v4 = vld [vmem:[%s8862_s1 + $0x7a4] ss:$48 sps:$4 sm:$0xff]  }
  0x7b   :  { %1936 = vmatpush1.bf16.msra.mxu1 %v6036_v53  ;;  %2191 = vmatprep.subr.bf16.mxu0 %v6125_v5  ;;  %v6134_v53 = vld [vmem:[%s8862_s1 + $0x84c] ss:$48 sps:$4 sm:$0xff]   ;;  %v7436_v5 = vld [vmem:[%s8861_s0 + $0x4] ss:$12 sps:$4 sm:$0xff]  }
  0x7c   :  { %1937 = vmatprep.subr.bf16.mxu1 %v6044_v54  ;;  %v6189_v54 = vld [vmem:[%s8862_s1 + $0x620] ss:$48 sps:$4 sm:$0xff]  }
  0x7e   :  { %2192 = vmatpush1.bf16.msra.mxu0 %v6123_v8  ;;  %v6221_v8 = vld [vmem:[%s8862_s1 + $0x804] ss:$48 sps:$4 sm:$0xff]  }
  0x7f   :  { %1938 = vmatpush1.bf16.msra.mxu1 %v6042_v58  ;;  %2193 = vmatprep.subr.bf16.mxu0 %v6131_v9  ;;  %v6140_v58 = vld [vmem:[%s8862_s1 + $0x8ac] ss:$48 sps:$4 sm:$0xff]   ;;  %v6156_v9 = vld [vmem:[%s8862_s1 + $0xd8] ss:$48 sps:$4 sm:$0xff]  }
  0x80   :  { %1939 = vmatprep.subr.bf16.mxu1 %v6050_v59  ;;  %v6138_v59 = vld [vmem:[%s8862_s1 + $0x8a8] ss:$48 sps:$4 sm:$0xff]  }
  0x82   :  { %2194 = vmatpush1.bf16.msra.mxu0 %v6129_v12  ;;  %v6227_v12 = vld [vmem:[%s8862_s1 + $0x864] ss:$48 sps:$4 sm:$0xff]  }
  0x83   :  { %1940 = vmatpush1.bf16.msra.mxu1 %v6048_v61  ;;  %2195 = vmatprep.subr.bf16.mxu0 %v6137_v13  ;;  %v6144_v61 = vld [vmem:[%s8862_s1 + $0x18] ss:$48 sps:$4 sm:$0xff]  }
  0x84   :  { %1941 = vmatprep.subr.bf16.mxu1 %v6056_v62  ;;  %v6201_v62 = vld [vmem:[%s8862_s1 + $0x6e0] ss:$48 sps:$4 sm:$0xff]   ;;  %v6162_v13 = vld [vmem:[%s8862_s1 + $0x138] ss:$48 sps:$4 sm:$0xff]  }
  0x86   :  { %2196 = vmatpush1.bf16.msra.mxu0 %v6135_v17  ;;  %v6233_v17 = vld [vmem:[%s8862_s1 + $0x8c4] ss:$48 sps:$4 sm:$0xff]  }
  0x87   :  { %1942 = vmatpush1.bf16.msra.mxu1 %v6054_v2  ;;  %2197 = vmatprep.subr.bf16.mxu0 %v6143_v18  ;;  %v6207_v2 = vld [vmem:[%s8862_s1 + $0x740] ss:$48 sps:$4 sm:$0xff]   ;;  %v6168_v18 = vld [vmem:[%s8862_s1 + $0x198] ss:$48 sps:$4 sm:$0xff]  }
  0x88   :  { %1943 = vmatprep.subr.bf16.mxu1 %v6062_v3  ;;  %v6150_v3 = vld [vmem:[%s8862_s1 + $0x78] ss:$48 sps:$4 sm:$0xff]  }
  0x8a   :  { %2198 = vmatpush1.bf16.msra.mxu0 %v6141_v21  ;;  %v6231_v21 = vld [vmem:[%s8862_s1 + $0x8c0] ss:$48 sps:$4 sm:$0xff]  }
  0x8b   :  { %1944 = vmatpush1.bf16.msra.mxu1 %v6060_v6  ;;  %2199 = vmatprep.subr.bf16.mxu0 %v6149_v22  ;;  %v6158_v6 = vld [vmem:[%s8862_s1 + $0xdc] ss:$48 sps:$4 sm:$0xff]   ;;  %v6257_v22 = vld [vmem:[%s8864_s3 + $0x4] ss:$12 sps:$4 sm:$0xff]  }
  0x8c   :  { %1945 = vmatprep.subr.bf16.mxu1 %v6068_v7  ;;  %v6213_v7 = vld [vmem:[%s8862_s1 + $0x7a0] ss:$48 sps:$4 sm:$0xff]  }
  0x8e   :  { %2200 = vmatpush1.bf16.msra.mxu0 %v6147_v26  ;;  %v6263_v26 = vld [vmem:[%s8864_s3 + $0x1c] ss:$12 sps:$4 sm:$0xff]  }
  0x8f   :  { %1946 = vmatpush1.bf16.msra.mxu1 %v6066_v10  ;;  %2201 = vmatprep.subr.bf16.mxu0 %v6155_v27  ;;  %v6164_v10 = vld [vmem:[%s8862_s1 + $0x13c] ss:$48 sps:$4 sm:$0xff]   ;;  %v6180_v27 = vld [vmem:[%s8862_s1 + $0x258] ss:$48 sps:$4 sm:$0xff]  }
  0x90   :  { %1947 = vmatprep.subr.bf16.mxu1 %v6074_v11  ;;  %v6219_v11 = vld [vmem:[%s8862_s1 + $0x800] ss:$48 sps:$4 sm:$0xff]  }
  0x92   :  { %2202 = vmatpush1.bf16.msra.mxu0 %v6153_v30  ;;  %v6269_v30 = vld [vmem:[%s8864_s3 + $0x34] ss:$12 sps:$4 sm:$0xff]  }
  0x93   :  { %1948 = vmatpush1.bf16.msra.mxu1 %v6072_v14  ;;  %2203 = vmatprep.subr.bf16.mxu0 %v6161_v31  ;;  %v6170_v14 = vld [vmem:[%s8862_s1 + $0x19c] ss:$48 sps:$4 sm:$0xff]   ;;  %v6186_v31 = vld [vmem:[%s8862_s1 + $0x2b8] ss:$48 sps:$4 sm:$0xff]  }
  0x94   :  { %1949 = vmatprep.subr.bf16.mxu1 %v6080_v15  ;;  %v6225_v15 = vld [vmem:[%s8862_s1 + $0x860] ss:$48 sps:$4 sm:$0xff]  }
  0x96   :  { %2204 = vmatpush1.bf16.msra.mxu0 %v6159_v34  ;;  %v6192_v34 = vld [vmem:[%s8862_s1 + $0x318] ss:$48 sps:$4 sm:$0xff]  }
  0x97   :  { %1950 = vmatpush1.bf16.msra.mxu1 %v6078_v19  ;;  %2205 = vmatprep.subr.bf16.mxu0 %v6167_v35  ;;  %v6176_v19 = vld [vmem:[%s8862_s1 + $0x1fc] ss:$48 sps:$4 sm:$0xff]  }
  0x98   :  { %1951 = vmatprep.subr.bf16.mxu1 %v6086_v20  ;;  %v6174_v20 = vld [vmem:[%s8862_s1 + $0x1f8] ss:$48 sps:$4 sm:$0xff]   ;;  %v6200_v35 = vld [vmem:[%s8862_s1 + $0x37c] ss:$48 sps:$4 sm:$0xff]  }
  0x9a   :  { %2206 = vmatpush1.bf16.msra.mxu0 %v6165_v38  ;;  %v6198_v38 = vld [vmem:[%s8862_s1 + $0x378] ss:$48 sps:$4 sm:$0xff]  }
  0x9b   :  { %1952 = vmatpush1.bf16.msra.mxu1 %v6084_v23  ;;  %2207 = vmatprep.subr.bf16.mxu0 %v6173_v39  ;;  %v6182_v23 = vld [vmem:[%s8862_s1 + $0x25c] ss:$48 sps:$4 sm:$0xff]  }
  0x9c   :  { %1953 = vmatprep.subr.bf16.mxu1 %v6092_v24  ;;  %v6255_v24 = vld [vmem:[%s8864_s3] ss:$12 sps:$4 sm:$0xff]  }
  0x9d   :  { %v6206_v39 = vld [vmem:[%s8862_s1 + $0x3dc] ss:$48 sps:$4 sm:$0xff]  }
  0x9e   :  { %2208 = vmatpush1.bf16.msra.mxu0 %v6171_v42  ;;  %v6204_v42 = vld [vmem:[%s8862_s1 + $0x3d8] ss:$48 sps:$4 sm:$0xff]  }
  0x9f   :  { %1954 = vmatpush1.bf16.msra.mxu1 %v6090_v28  ;;  %2209 = vmatprep.subr.bf16.mxu0 %v6179_v43  ;;  %v6188_v28 = vld [vmem:[%s8862_s1 + $0x2bc] ss:$48 sps:$4 sm:$0xff]  }
  0xa0   :  { %1966 = vmatprep.subr.bf16.mxu1 %v6098_v29  ;;  %v6261_v29 = vld [vmem:[%s8864_s3 + $0x18] ss:$12 sps:$4 sm:$0xff]   ;;  %v6212_v43 = vld [vmem:[%s8862_s1 + $0x43c] ss:$48 sps:$4 sm:$0xff]  }
  0xa2   :  { %1956 = vmatmul.mubr.bf16.vlgmr.msra.gmra.mrb[4].mxu1 %v7008_v55  ;;  %2210 = vmatpush1.bf16.msra.mxu0 %v6177_v46  ;;  %v6210_v46 = vld [vmem:[%s8862_s1 + $0x438] ss:$48 sps:$4 sm:$0xff]  }
  0xa3   :  { %1967 = vmatpush1.bf16.msra.mxu1 %v6096_v32  ;;  %1998 = vmatprep.mubr.bf16.mxu1 %v6797_v63  ;;  %v6194_v32 = vld [vmem:[%s8862_s1 + $0x31c] ss:$48 sps:$4 sm:$0xff]  }
  0xa4   :  { %1968 = vmatprep.subr.bf16.mxu1 %v6104_v33  ;;  %2211 = vmatprep.subr.bf16.mxu0 %v6185_v47  ;;  %v6267_v33 = vld [vmem:[%s8864_s3 + $0x30] ss:$12 sps:$4 sm:$0xff]  }
  0xa5   :  { %v6218_v47 = vld [vmem:[%s8862_s1 + $0x49c] ss:$48 sps:$4 sm:$0xff]  }
  0xa6   :  { %2212 = vmatpush1.bf16.msra.mxu0 %v6183_v50  ;;  %v6216_v50 = vld [vmem:[%s8862_s1 + $0x498] ss:$48 sps:$4 sm:$0xff]  }
  0xa7   :  { %1969 = vmatpush1.bf16.msra.mxu1 %v6102_v36  ;;  %2224 = vmatprep.subr.bf16.mxu0 %v6191_v51  ;;  %v6273_v36 = vld [vmem:[%s8864_s3 + $0x48] ss:$12 sps:$4 sm:$0xff]   ;;  %v6224_v51 = vld [vmem:[%s8862_s1 + $0x4fc] ss:$48 sps:$4 sm:$0xff]  }
  0xa8   :  { %1970 = vmatprep.subr.bf16.mxu1 %v6110_v37  ;;  %v6281_v37 = vld [vmem:[%s8864_s3 + $0x64] ss:$12 sps:$4 sm:$0xff]  }
  0xa9   :  { %2214 = vmatmul.mubr.bf16.vlgmr.msra.gmra.mrb[4].mxu0 %v7008_v55  ;;  %v6146_v55 = vld [vmem:[%s8862_s1 + $0x1c] ss:$48 sps:$4 sm:$0xff]  }
  0xaa   :  { %2225 = vmatpush1.bf16.msra.mxu0 %v6189_v54  ;;  %2256 = vmatprep.mubr.bf16.mxu0 %v6797_v63  ;;  %v6222_v54 = vld [vmem:[%s8862_s1 + $0x4f8] ss:$48 sps:$4 sm:$0xff]  }
  0xab   :  { %1971 = vmatpush1.bf16.msra.mxu1 %v6108_v40  ;;  %2226 = vmatprep.subr.bf16.mxu0 %v6197_v57  ;;  %v6279_v40 = vld [vmem:[%s8864_s3 + $0x60] ss:$12 sps:$4 sm:$0xff]  }
  0xac   :  { %1972 = vmatprep.subr.bf16.mxu1 %v6116_v41  ;;  %v6287_v41 = vld [vmem:[%s8864_s3 + $0x7c] ss:$12 sps:$4 sm:$0xff]   ;;  %v6303_v57 = vld [vmem:[%s8864_s3 + $0xc0] ss:$12 sps:$4 sm:$0xff]  }
  0xae   :  { %2227 = vmatpush1.bf16.msra.mxu0 %v6195_v16  ;;  %v6236_v16 = vld [vmem:[%s8862_s1 + $0x5bc] ss:$48 sps:$4 sm:$0xff]  }
  0xaf   :  { %1973 = vmatpush1.bf16.msra.mxu1 %v6114_v44  ;;  %2228 = vmatprep.subr.bf16.mxu0 %v6203_v60  ;;  %v6285_v44 = vld [vmem:[%s8864_s3 + $0x78] ss:$12 sps:$4 sm:$0xff]  }
  0xb0   :  { %1974 = vmatprep.subr.bf16.mxu1 %v6122_v45  ;;  %v6293_v45 = vld [vmem:[%s8864_s3 + $0x94] ss:$12 sps:$4 sm:$0xff]   ;;  %v6309_v60 = vld [vmem:[%s8864_s3 + $0xd8] ss:$12 sps:$4 sm:$0xff]  }
  0xb2   :  { %2229 = vmatpush1.bf16.msra.mxu0 %v6201_v62  ;;  %v6239_v62 = vld [vmem:[%s8862_s1 + $0x61c] ss:$48 sps:$4 sm:$0xff]  }
  0xb3   :  { %1975 = vmatpush1.bf16.msra.mxu1 %v6120_v48  ;;  %2230 = vmatprep.subr.bf16.mxu0 %v6209_v0  ;;  %v6291_v48 = vld [vmem:[%s8864_s3 + $0x90] ss:$12 sps:$4 sm:$0xff]  }
  0xb4   :  { %1976 = vmatprep.subr.bf16.mxu1 %v6128_v49  ;;  %v6299_v49 = vld [vmem:[%s8864_s3 + $0xac] ss:$12 sps:$4 sm:$0xff]   ;;  %v6315_v0 = vld [vmem:[%s8864_s3 + $0xf0] ss:$12 sps:$4 sm:$0xff]  }
  0xb6   :  { %2231 = vmatpush1.bf16.msra.mxu0 %v6207_v2  ;;  %v6237_v2 = vld [vmem:[%s8862_s1 + $0x618] ss:$48 sps:$4 sm:$0xff]  }
  0xb7   :  { %1977 = vmatpush1.bf16.msra.mxu1 %v6126_v52  ;;  %2232 = vmatprep.subr.bf16.mxu0 %v6215_v4  ;;  %v6297_v52 = vld [vmem:[%s8864_s3 + $0xa8] ss:$12 sps:$4 sm:$0xff]  }
  0xb8   :  { %1978 = vmatprep.subr.bf16.mxu1 %v6134_v53  ;;  %v6305_v53 = vld [vmem:[%s8864_s3 + $0xc4] ss:$12 sps:$4 sm:$0xff]   ;;  %v6321_v4 = vld [vmem:[%s8864_s3 + $0x108] ss:$12 sps:$4 sm:$0xff]  }
  0xba   :  { %2233 = vmatpush1.bf16.msra.mxu0 %v6213_v7  ;;  %v7632_v7 = vld [vmem:[%s8861_s0] ss:$12 sps:$4 sm:$0xff]  }
  0xbb   :  { %1979 = vmatpush1.bf16.msra.mxu1 %v6132_v56  ;;  %2234 = vmatprep.subr.bf16.mxu0 %v6221_v8  ;;  %v6230_v56 = vld [vmem:[%s8862_s1 + $0x55c] ss:$48 sps:$4 sm:$0xff]   ;;  %v6240_v8 = vld [vmem:[%s8862_s1 + $0x678] ss:$48 sps:$4 sm:$0xff]  }
  0xbc   :  { %1980 = vmatprep.subr.bf16.mxu1 %v6140_v58  ;;  %v6311_v58 = vld [vmem:[%s8864_s3 + $0xdc] ss:$12 sps:$4 sm:$0xff]  }
  0xbe   :  { %2235 = vmatpush1.bf16.msra.mxu0 %v6219_v11  ;;  %v6335_v11 = vld [vmem:[%s8864_s3 + $0x13c] ss:$12 sps:$4 sm:$0xff]  }
  0xbf   :  { %1981 = vmatpush1.bf16.msra.mxu1 %v6138_v59  ;;  %2236 = vmatprep.subr.bf16.mxu0 %v6227_v12  ;;  %v6228_v59 = vld [vmem:[%s8862_s1 + $0x558] ss:$48 sps:$4 sm:$0xff]  }
  0xc0   :  { %2095 = vmatprep.subr.bf16.mxu1 %v6146_v55  ;;  %v6317_v55 = vld [vmem:[%s8864_s3 + $0xf4] ss:$12 sps:$4 sm:$0xff]   ;;  %v6243_v12 = vld [vmem:[%s8862_s1 + $0x6d8] ss:$48 sps:$4 sm:$0xff]  }
  0xc2   :  { %1999 = vmatmul.mubr.bf16.vlgmr.msra.gmra.mrb[4].mxu1 %v7110_v25  ;;  %2237 = vmatpush1.bf16.msra.mxu0 %v6225_v15  ;;  %v6341_v15 = vld [vmem:[%s8864_s3 + $0x154] ss:$12 sps:$4 sm:$0xff]  }
  0xc3   :  { %2096 = vmatpush1.bf16.msra.mxu1 %v6144_v61  ;;  %2127 = vmatprep.mubr.bf16.mxu1 %v7436_v5  ;;  %v6234_v61 = vld [vmem:[%s8862_s1 + $0x5b8] ss:$48 sps:$4 sm:$0xff]  }
  0xc4   :  { %2097 = vmatprep.subr.bf16.mxu1 %v6152_v1  ;;  %2238 = vmatprep.subr.bf16.mxu0 %v6233_v17  ;;  %v6323_v1 = vld [vmem:[%s8864_s3 + $0x10c] ss:$12 sps:$4 sm:$0xff]  }
  0xc5   :  { %v6246_v17 = vld [vmem:[%s8862_s1 + $0x738] ss:$48 sps:$4 sm:$0xff]  }
  0xc6   :  { %2239 = vmatpush1.bf16.msra.mxu0 %v6231_v21  ;;  %v6249_v21 = vld [vmem:[%s8862_s1 + $0x798] ss:$48 sps:$4 sm:$0xff]  }
  0xc7   :  { %2098 = vmatpush1.bf16.msra.mxu1 %v6150_v3  ;;  %4518 = vmatprep.subr.bf16.mxu0 %v6257_v22  ;;  %v6242_v3 = vld [vmem:[%s8862_s1 + $0x67c] ss:$48 sps:$4 sm:$0xff]  }
  0xc8   :  { %2099 = vmatprep.subr.bf16.mxu1 %v6158_v6  ;;  %v6329_v6 = vld [vmem:[%s8864_s3 + $0x124] ss:$12 sps:$4 sm:$0xff]   ;;  %v6254_v22 = vld [vmem:[%s8862_s1 + $0x7fc] ss:$48 sps:$4 sm:$0xff]  }
  0xc9   :  { %2257 = vmatmul.mubr.bf16.vlgmr.msra.gmra.mrb[4].mxu0 %v7110_v25  ;;  %v6275_v25 = vld [vmem:[%s8864_s3 + $0x4c] ss:$12 sps:$4 sm:$0xff]  }
  0xca   :  { %4519 = vmatpush1.bf16.msra.mxu0 %v6255_v24  ;;  %v6377_v24 = vld [vmem:[%s8864_s3 + $0x184] ss:$12 sps:$4 sm:$0xff]  }
  0xcb   :  { %2100 = vmatpush1.bf16.msra.mxu1 %v6156_v9  ;;  %4520 = vmatprep.subr.bf16.mxu0 %v6263_v26  ;;  %v6245_v9 = vld [vmem:[%s8862_s1 + $0x6dc] ss:$48 sps:$4 sm:$0xff]   ;;  %v6252_v26 = vld [vmem:[%s8862_s1 + $0x7f8] ss:$48 sps:$4 sm:$0xff]  }
  0xcc   :  { %2101 = vmatprep.subr.bf16.mxu1 %v6164_v10  ;;  %v6327_v10 = vld [vmem:[%s8864_s3 + $0x120] ss:$12 sps:$4 sm:$0xff]  }
  0xce   :  { %4521 = vmatpush1.bf16.msra.mxu0 %v6261_v29  ;;  %v6266_v29 = vld [vmem:[%s8862_s1 + $0x8bc] ss:$48 sps:$4 sm:$0xff]  }
  0xcf   :  { %2102 = vmatpush1.bf16.msra.mxu1 %v6162_v13  ;;  %4522 = vmatprep.subr.bf16.mxu0 %v6269_v30  ;;  %v6248_v13 = vld [vmem:[%s8862_s1 + $0x73c] ss:$48 sps:$4 sm:$0xff]   ;;  %v6264_v30 = vld [vmem:[%s8862_s1 + $0x8b8] ss:$48 sps:$4 sm:$0xff]  }
  0xd0   :  { %2103 = vmatprep.subr.bf16.mxu1 %v6170_v14  ;;  %v6333_v14 = vld [vmem:[%s8864_s3 + $0x138] ss:$12 sps:$4 sm:$0xff]  }
  0xd2   :  { %4523 = vmatpush1.bf16.msra.mxu0 %v6267_v33  ;;  %v6278_v33 = vld [vmem:[%s8862_s1 + $0x8c] ss:$48 sps:$4 sm:$0xff]  }
  0xd3   :  { %2104 = vmatpush1.bf16.msra.mxu1 %v6168_v18  ;;  %4524 = vmatprep.subr.bf16.mxu0 %v6275_v25  ;;  %v6251_v18 = vld [vmem:[%s8862_s1 + $0x79c] ss:$48 sps:$4 sm:$0xff]   ;;  %v6276_v25 = vld [vmem:[%s8862_s1 + $0x88] ss:$48 sps:$4 sm:$0xff]  }
  0xd4   :  { %2105 = vmatprep.subr.bf16.mxu1 %v6176_v19  ;;  %v6339_v19 = vld [vmem:[%s8864_s3 + $0x150] ss:$12 sps:$4 sm:$0xff]  }
  0xd6   :  { %4525 = vmatpush1.bf16.msra.mxu0 %v6273_v36  ;;  %v321_v36 = vlaneseq }
  0xd7   :  { %2106 = vmatpush1.bf16.msra.mxu1 %v6174_v20  ;;  %4526 = vmatprep.subr.bf16.mxu0 %v6281_v37  ;;  %v6347_v20 = vld [vmem:[%s8864_s3 + $0x16c] ss:$12 sps:$4 sm:$0xff]  }
  0xd8   :  { %2107 = vmatprep.subr.bf16.mxu1 %v6182_v23  ;;  %v6345_v23 = vld [vmem:[%s8864_s3 + $0x168] ss:$12 sps:$4 sm:$0xff]  }
  0xd9   :  { %v6282_v37 = vld [vmem:[%s8862_s1 + $0xe8] ss:$48 sps:$4 sm:$0xff]  }
  0xda   :  { %4527 = vmatpush1.bf16.msra.mxu0 %v6279_v40  ;;  %v6296_v40 = vld [vmem:[%s8862_s1 + $0x1ac] ss:$48 sps:$4 sm:$0xff]  }
  0xdb   :  { %2108 = vmatpush1.bf16.msra.mxu1 %v6180_v27  ;;  %4528 = vmatprep.subr.bf16.mxu0 %v6287_v41  ;;  %v6260_v27 = vld [vmem:[%s8862_s1 + $0x85c] ss:$48 sps:$4 sm:$0xff]  }
  0xdc   :  { %2109 = vmatprep.subr.bf16.mxu1 %v6188_v28  ;;  %v6258_v28 = vld [vmem:[%s8862_s1 + $0x858] ss:$48 sps:$4 sm:$0xff]  }
  0xde   :  { %4529 = vmatpush1.bf16.msra.mxu0 %v6285_v44 }
  0xdf   :  { %2110 = vmatpush1.bf16.msra.mxu1 %v6186_v31  ;;  %4530 = vmatprep.subr.bf16.mxu0 %v6293_v45  ;;  %v6272_v31 = vld [vmem:[%s8862_s1 + $0x2c] ss:$48 sps:$4 sm:$0xff]  }
  0xe0   :  { %2111 = vmatprep.subr.bf16.mxu1 %v6194_v32  ;;  %v6270_v32 = vld [vmem:[%s8862_s1 + $0x28] ss:$48 sps:$4 sm:$0xff]   ;;  %v6302_v45 = vld [vmem:[%s8862_s1 + $0x20c] ss:$48 sps:$4 sm:$0xff]  }
  0xe2   :  { %4531 = vmatpush1.bf16.msra.mxu0 %v6291_v48 }
  0xe3   :  { %2112 = vmatpush1.bf16.msra.mxu1 %v6192_v34  ;;  %4532 = vmatprep.subr.bf16.mxu0 %v6299_v49  ;;  %v7714_v34 = vld [vmem:[%s8861_s0 + $0x8] ss:$12 sps:$4 sm:$0xff]   ;;  %v6308_v49 = vld [vmem:[%s8862_s1 + $0x26c] ss:$48 sps:$4 sm:$0xff]  }
  0xe4   :  { %2113 = vmatprep.subr.bf16.mxu1 %v6200_v35  ;;  %v6284_v35 = vld [vmem:[%s8862_s1 + $0xec] ss:$48 sps:$4 sm:$0xff]  }
  0xe6   :  { %4533 = vmatpush1.bf16.msra.mxu0 %v6297_v52 }
  0xe7   :  { %2114 = vmatpush1.bf16.msra.mxu1 %v6198_v38  ;;  %4534 = vmatprep.subr.bf16.mxu0 %v6305_v53  ;;  %v6290_v38 = vld [vmem:[%s8862_s1 + $0x14c] ss:$48 sps:$4 sm:$0xff]   ;;  %v6306_v53 = vld [vmem:[%s8862_s1 + $0x268] ss:$48 sps:$4 sm:$0xff]  }
  0xe8   :  { %2115 = vmatprep.subr.bf16.mxu1 %v6206_v39  ;;  %v7727_v39 = vshrl.u32 %v321_v36, 7 }
  0xea   :  { %4535 = vmatpush1.bf16.msra.mxu0 %v6303_v57  ;;  %v7736_v41 = vsub.s32 0, %v7727_v39  ;;  %v7747_v44 = vsub.s32 1, %v7727_v39 }
  0xeb   :  { %2116 = vmatpush1.bf16.msra.mxu1 %v6204_v42  ;;  %4536 = vmatprep.subr.bf16.mxu0 %v6311_v58  ;;  %v6294_v42 = vld [vmem:[%s8862_s1 + $0x1a8] ss:$48 sps:$4 sm:$0xff]  }
  0xec   :  { %2117 = vmatprep.subr.bf16.mxu1 %v6212_v43  ;;  %v7744_v43 = vld [vmem:[%s8863_s2] sm:$0xff] }
  0xed   :  { %v328_v48 = vrot.slane %v7744_v43, %v7747_v44 }
  0xee   :  { %4537 = vmatpush1.bf16.msra.mxu0 %v6309_v60 }
  0xef   :  { %2118 = vmatpush1.bf16.msra.mxu1 %v6210_v46  ;;  %4538 = vmatprep.subr.bf16.mxu0 %v6317_v55  ;;  %v6300_v46 = vld [vmem:[%s8862_s1 + $0x208] ss:$48 sps:$4 sm:$0xff]  }
  0xf0   :  { %2119 = vmatprep.subr.bf16.mxu1 %v6218_v47  ;;  %v324_v47 = vrot.slane %v7744_v43, %v7736_v41 }
  0xf2   :  { %4539 = vmatpush1.bf16.msra.mxu0 %v6315_v0  ;;  %v6312_v0 = vld [vmem:[%s8862_s1 + $0x2c8] ss:$48 sps:$4 sm:$0xff]  }
  0xf3   :  { %2120 = vmatpush1.bf16.msra.mxu1 %v6216_v50  ;;  %4540 = vmatprep.subr.bf16.mxu0 %v6323_v1 }
  0xf4   :  { %2121 = vmatprep.subr.bf16.mxu1 %v6224_v51 }
  0xf6   :  { %4541 = vmatpush1.bf16.msra.mxu0 %v6321_v4 }
  0xf7   :  { %2122 = vmatpush1.bf16.msra.mxu1 %v6222_v54  ;;  %4542 = vmatprep.subr.bf16.mxu0 %v6329_v6  ;;  %v6320_v6 = vld [vmem:[%s8862_s1 + $0x32c] ss:$48 sps:$4 sm:$0xff]  }
  0xf8   :  { %2123 = vmatprep.subr.bf16.mxu1 %v6230_v56 }
  0xfa   :  { %4543 = vmatpush1.bf16.msra.mxu0 %v6327_v10 }
  0xfb   :  { %2124 = vmatpush1.bf16.msra.mxu1 %v6228_v59  ;;  %4544 = vmatprep.subr.bf16.mxu0 %v6335_v11 }
  0xfc   :  { %2125 = vmatprep.subr.bf16.mxu1 %v6236_v16  ;;  %v6314_v16 = vld [vmem:[%s8862_s1 + $0x2cc] ss:$48 sps:$4 sm:$0xff]  }
  0xfe   :  { %4545 = vmatpush1.bf16.msra.mxu0 %v6333_v14 }
  0xff   :  { %2126 = vmatpush1.bf16.msra.mxu1 %v6234_v61  ;;  %4546 = vmatprep.subr.bf16.mxu0 %v6341_v15 }
 0x100   :  { %2138 = vmatprep.subr.bf16.mxu1 %v6239_v62 }
 0x102   :  { %2128 = vmatmul.mubr.bf16.vlgmr.msra.gmra.mrb[8].mxu1 %v7632_v7  ;;  %4547 = vmatpush1.bf16.msra.mxu0 %v6339_v19 }
 0x103   :  { %2139 = vmatpush1.bf16.msra.mxu1 %v6237_v2  ;;  %2170 = vmatprep.mubr.bf16.mxu1 %v6797_v63 }
 0x104   :  { %2140 = vmatprep.subr.bf16.mxu1 %v6242_v3  ;;  %4548 = vmatprep.subr.bf16.mxu0 %v6347_v20 }
 0x106   :  { %4549 = vmatpush1.bf16.msra.mxu0 %v6345_v23 }
 0x107   :  { %2141 = vmatpush1.bf16.msra.mxu1 %v6240_v8  ;;  %4561 = vmatprep.subr.bf16.mxu0 %v6377_v24  ;;  %v6332_v24 = vld [vmem:[%s8862_s1 + $0x3ec] ss:$48 sps:$4 sm:$0xff]  }
 0x108   :  { %2142 = vmatprep.subr.bf16.mxu1 %v6245_v9 }
 0x10b   :  { %2143 = vmatpush1.bf16.msra.mxu1 %v6243_v12  ;;  %v6318_v12 = vld [vmem:[%s8862_s1 + $0x328] ss:$48 sps:$4 sm:$0xff]  }
 0x10c   :  { %2144 = vmatprep.subr.bf16.mxu1 %v6248_v13 }
 0x10f   :  { %2145 = vmatpush1.bf16.msra.mxu1 %v6246_v17 }
 0x110   :  { %2146 = vmatprep.subr.bf16.mxu1 %v6251_v18  ;;  %v6326_v18 = vld [vmem:[%s8862_s1 + $0x38c] ss:$48 sps:$4 sm:$0xff]  }
 0x113   :  { %2147 = vmatpush1.bf16.msra.mxu1 %v6249_v21 }
 0x114   :  { %2148 = vmatprep.subr.bf16.mxu1 %v6254_v22  ;;  %v6324_v22 = vld [vmem:[%s8862_s1 + $0x388] ss:$48 sps:$4 sm:$0xff]  }
 0x117   :  { %2149 = vmatpush1.bf16.msra.mxu1 %v6252_v26  ;;  %v339_v26 = vsub.s32 4, %v7727_v39 }
 0x118   :  { %2150 = vmatprep.subr.bf16.mxu1 %v6260_v27  ;;  %v343_v27 = vsub.s32 5, %v7727_v39 }
 0x11b   :  { %2151 = vmatpush1.bf16.msra.mxu1 %v6258_v28  ;;  %v6330_v28 = vld [vmem:[%s8862_s1 + $0x3e8] ss:$48 sps:$4 sm:$0xff]  }
 0x11c   :  { %2152 = vmatprep.subr.bf16.mxu1 %v6266_v29  ;;  %v6338_v29 = vld [vmem:[%s8862_s1 + $0x44c] ss:$48 sps:$4 sm:$0xff]  }
 0x11f   :  { %2153 = vmatpush1.bf16.msra.mxu1 %v6264_v30  ;;  %v340_v30 = vrot.slane %v7744_v43, %v339_v26 }
 0x120   :  { %2267 = vmatprep.subr.bf16.mxu1 %v6272_v31  ;;  %v344_v31 = vrot.slane %v7744_v43, %v343_v27 }
 0x122   :  { %2171 = vmatmul.mubr.bf16.vlgmr.msra.gmra.mrb[8].mxu1 %v7714_v34 }
 0x123   :  { %2268 = vmatpush1.bf16.msra.mxu1 %v6270_v32  ;;  %2299 = vmatprep.mubr.bf16.mxu1 %v7436_v5  ;;  %v6288_v5 = vld [vmem:[%s8862_s1 + $0x148] ss:$48 sps:$4 sm:$0xff]  }
 0x124   :  { %2269 = vmatprep.subr.bf16.mxu1 %v6278_v33  ;;  %v6336_v32 = vld [vmem:[%s8862_s1 + $0x448] ss:$48 sps:$4 sm:$0xff]  }
 0x127   :  { %2270 = vmatpush1.bf16.msra.mxu1 %v6276_v25 }
 0x128   :  { %2271 = vmatprep.subr.bf16.mxu1 %v6284_v35  ;;  %v6344_v35 = vld [vmem:[%s8862_s1 + $0x4ac] ss:$48 sps:$4 sm:$0xff]  }
 0x12b   :  { %2272 = vmatpush1.bf16.msra.mxu1 %v6282_v37 }
 0x12c   :  { %2273 = vmatprep.subr.bf16.mxu1 %v6290_v38 }
 0x12f   :  { %2274 = vmatpush1.bf16.msra.mxu1 %v6288_v5 }
 0x130   :  { %2275 = vmatprep.subr.bf16.mxu1 %v6296_v40 }
 0x133   :  { %2276 = vmatpush1.bf16.msra.mxu1 %v6294_v42 }
 0x134   :  { %2277 = vmatprep.subr.bf16.mxu1 %v6302_v45 }
 0x135   :  { %v1914_v50 = vpop.f32.mrb[0].mxu1 }
 0x136   :  { %v7762_v51 = vadd.f32 %v1914_v50, %v324_v47  ;;  %v1916_v52 = vpop.f32.mrb[1].mxu1 }
 0x137   :  { %v7767_v54 = vadd.f32 %v1916_v52, %v328_v48  ;;  %v1918_v56 = vpop.f32.mrb[2].mxu1  ;;  %2278 = vmatpush1.bf16.msra.mxu1 %v6300_v46 }
 0x138   :  { %v2377_v57 = vmul.f32 %v7762_v51, %v7762_v51  ;;  %v7771_v58 = vadd.f32 %v1918_v56, %v324_v47  ;;  %v1920_v59 = vpop.f32.mrb[3].mxu1  ;;  %2279 = vmatprep.subr.bf16.mxu1 %v6308_v49  ;;  %v2353_v5 = vmul.f32 0.5, %v7762_v51  ;;  %v6342_v47 = vld [vmem:[%s8862_s1 + $0x4a8] ss:$48 sps:$4 sm:$0xff]  }
 0x139   :  { %v2378_v60 = vmul.f32 %v7767_v54, %v7767_v54  ;;  %v7778_v55 = vadd.f32 %v1920_v59, %v328_v48  ;;  %v2354_v48 = vmul.f32 0.5, %v7767_v54 }
 0x13a   :  { %v2401_v61 = vmul.f32 %v7762_v51, %v2377_v57  ;;  %v2389_v62 = vmul.f32 %v7771_v58, %v7771_v58 }
 0x13b   :  { %v2402_v1 = vmul.f32 %v7767_v54, %v2378_v60  ;;  %v2390_v2 = vmul.f32 %v7778_v55, %v7778_v55  ;;  %2280 = vmatpush1.bf16.msra.mxu1 %v6306_v53  ;;  %v2366_v60 = vmul.f32 0.5, %v7778_v55 }
 0x13c   :  { %v2425_v3 = vmul.f32 0.044715, %v2401_v61  ;;  %v2413_v4 = vmul.f32 %v7771_v58, %v2389_v62  ;;  %2281 = vmatprep.subr.bf16.mxu1 %v6314_v16  ;;  %v2086_v33 = vpop.f32.mrb[0].mxu0 }
 0x13d   :  { %v2426_v8 = vmul.f32 0.044715, %v2402_v1  ;;  %v2414_v9 = vmul.f32 %v7778_v55, %v2390_v2  ;;  %v7826_v36 = vadd.f32 %v2086_v33, %v340_v30  ;;  %v2088_v37 = vpop.f32.mrb[1].mxu0  ;;  %v6354_v33 = vld [vmem:[%s8862_s1 + $0x5c8] ss:$48 sps:$4 sm:$0xff]  }
 0x13e   :  { %v2449_v10 = vadd.f32 %v7762_v51, %v2425_v3  ;;  %v2437_v11 = vmul.f32 0.044715, %v2413_v4  ;;  %v7829_v42 = vadd.f32 %v2088_v37, %v344_v31  ;;  %v2090_v45 = vpop.f32.mrb[2].mxu0  ;;  %v2365_v51 = vmul.f32 0.5, %v7771_v58  ;;  %v6348_v4 = vld [vmem:[%s8862_s1 + $0x508] ss:$48 sps:$4 sm:$0xff]  }
 0x13f   :  { %v2450_v13 = vadd.f32 %v7767_v54, %v2426_v8  ;;  %v2438_v14 = vmul.f32 0.044715, %v2414_v9  ;;  %2282 = vmatpush1.bf16.msra.mxu1 %v6312_v0  ;;  %v2381_v50 = vmul.f32 %v7826_v36, %v7826_v36  ;;  %v7837_v52 = vadd.f32 %v2090_v45, %v340_v30  ;;  %v2092_v53 = vpop.f32.mrb[3].mxu0  ;;  %v6350_v54 = vld [vmem:[%s8862_s1 + $0x50c] ss:$48 sps:$4 sm:$0xff]  }
 0x140   :  { %v2473_v15 = vmul.f32 0.7978846, %v2449_v10  ;;  %v2461_v17 = vadd.f32 %v7771_v58, %v2437_v11  ;;  %2283 = vmatprep.subr.bf16.mxu1 %v6320_v6  ;;  %v2382_v59 = vmul.f32 %v7829_v42, %v7829_v42  ;;  %v7842_v16 = vadd.f32 %v2092_v53, %v344_v31  ;;  %v6357_v37 = vld [vmem:[%s8862_s1 + $0x628] ss:$48 sps:$4 sm:$0xff]   ;;  %v6397_v45 = vld [vmem:[%s8864_s3 + $0x1e4] ss:$12 sps:$4 sm:$0xff]  }
 0x141   :  { %v2474_v19 = vmul.f32 0.7978846, %v2450_v13  ;;  %v2462_v20 = vadd.f32 %v7778_v55, %v2438_v14  ;;  %v2405_v0 = vmul.f32 %v7826_v36, %v2381_v50  ;;  %v2393_v2 = vmul.f32 %v7837_v52, %v7837_v52  ;;  %v6353_v14 = vld [vmem:[%s8862_s1 + $0x56c] ss:$48 sps:$4 sm:$0xff]  }
 0x142   :  { %6717 = vtanh.f32 %v2473_v15  ;;  %v2485_v21 = vmul.f32 0.7978846, %v2461_v17  ;;  %v2406_v58 = vmul.f32 %v7829_v42, %v2382_v59  ;;  %v2394_v3 = vmul.f32 %v7842_v16, %v7842_v16  ;;  %v6375_v17 = vld [vmem:[%s8864_s3 + $0x180] ss:$12 sps:$4 sm:$0xff]  }
 0x143   :  { %6719 = vtanh.f32 %v2474_v19  ;;  %v2486_v23 = vmul.f32 0.7978846, %v2462_v20  ;;  %2284 = vmatpush1.bf16.msra.mxu1 %v6318_v12  ;;  %v2429_v55 = vmul.f32 0.044715, %v2405_v0  ;;  %v2417_v11 = vmul.f32 %v7837_v52, %v2393_v2  ;;  %v6395_v50 = vld [vmem:[%s8864_s3 + $0x1e0] ss:$12 sps:$4 sm:$0xff]  }
 0x144   :  { %6721 = vtanh.f32 %v2485_v21  ;;  %2285 = vmatprep.subr.bf16.mxu1 %v6326_v18  ;;  %v2430_v10 = vmul.f32 0.044715, %v2406_v58  ;;  %v2418_v12 = vmul.f32 %v7842_v16, %v2394_v3  ;;  %v6383_v21 = vld [vmem:[%s8864_s3 + $0x19c] ss:$12 sps:$4 sm:$0xff]  }
 0x145   :  { %6723 = vtanh.f32 %v2486_v23  ;;  %v2453_v15 = vadd.f32 %v7826_v36, %v2429_v55  ;;  %v2441_v19 = vmul.f32 0.044715, %v2417_v11  ;;  %v6366_v2 = vld [vmem:[%s8862_s1 + $0x748] ss:$48 sps:$4 sm:$0xff]   ;;  %v6405_v55 = vld [vmem:[%s8864_s3 + $0x210] ss:$12 sps:$4 sm:$0xff]  }
 0x146   :  { %v2454_v18 = vadd.f32 %v7829_v42, %v2430_v10  ;;  %v2442_v20 = vmul.f32 0.044715, %v2418_v12  ;;  %v6412_v10 = vld [vmem:[%s8864_s3 + $0x22c] ss:$12 sps:$4 sm:$0xff]  }
 0x147   :  { %2286 = vmatpush1.bf16.msra.mxu1 %v6324_v22  ;;  %v6351_v22 = vld [vmem:[%s8862_s1 + $0x568] ss:$48 sps:$4 sm:$0xff]   ;;  %v2477_v23 = vmul.f32 0.7978846, %v2453_v15  ;;  %v2465_v26 = vadd.f32 %v7837_v52, %v2441_v19  ;;  %v6374_v12 = vld [vmem:[%s8862_s1 + $0x80c] ss:$48 sps:$4 sm:$0xff]  }
 0x148   :  { %2287 = vmatprep.subr.bf16.mxu1 %v6332_v24  ;;  %v2478_v24 = vmul.f32 0.7978846, %v2454_v18  ;;  %v2466_v27 = vadd.f32 %v7842_v16, %v2442_v20  ;;  %v6369_v11 = vld [vmem:[%s8862_s1 + $0x7a8] ss:$48 sps:$4 sm:$0xff]   ;;  %v6417_v15 = vld [vmem:[%s8864_s3 + $0x244] ss:$12 sps:$4 sm:$0xff]  }
 0x149   :  { %6725 = vtanh.f32 %v2477_v23  ;;  %v2489_v30 = vmul.f32 0.7978846, %v2465_v26  ;;  %v6380_v18 = vld [vmem:[%s8862_s1 + $0x86c] ss:$48 sps:$4 sm:$0xff]   ;;  %v6378_v20 = vld [vmem:[%s8862_s1 + $0x868] ss:$48 sps:$4 sm:$0xff]  }
 0x14a   :  { %6727 = vtanh.f32 %v2478_v24  ;;  %v2490_v31 = vmul.f32 0.7978846, %v2466_v27  ;;  %v6415_v19 = vld [vmem:[%s8864_s3 + $0x240] ss:$12 sps:$4 sm:$0xff]   ;;  %v6420_v23 = vld [vmem:[%s8864_s3 + $0x258] ss:$12 sps:$4 sm:$0xff]  }
 0x14b   :  { %2288 = vmatpush1.bf16.msra.mxu1 %v6330_v28  ;;  %v6356_v28 = vld [vmem:[%s8862_s1 + $0x5cc] ss:$48 sps:$4 sm:$0xff]   ;;  %6729 = vtanh.f32 %v2489_v30  ;;  %v6427_v24 = vld [vmem:[%s8864_s3 + $0x274] ss:$12 sps:$4 sm:$0xff]   ;;  %v6384_v26 = vld [vmem:[%s8862_s1 + $0x8c8] ss:$48 sps:$4 sm:$0xff]  }
 0x14c   :  { %v6718_v25 = vpop.eup %6717  ;;  %2289 = vmatprep.subr.bf16.mxu1 %v6338_v29  ;;  %v6381_v29 = vld [vmem:[%s8864_s3 + $0x198] ss:$12 sps:$4 sm:$0xff]   ;;  %6731 = vtanh.f32 %v2490_v31 }
 0x14d   :  { %v6720_v38 = vpop.eup %6719  ;;  %v2521_v40 = vadd.f32 1.0, %v6718_v25  ;;  %v6359_v25 = vld [vmem:[%s8862_s1 + $0x62c] ss:$48 sps:$4 sm:$0xff]  }
 0x14e   :  { %v6722_v46 = vpop.eup %6721  ;;  %v2522_v49 = vadd.f32 1.0, %v6720_v38  ;;  %v6392_v38 = vld [vmem:[%s8864_s3 + $0x1cc] ss:$12 sps:$4 sm:$0xff]  }
 0x14f   :  { %v6724_v56 = vpop.eup %6723  ;;  %2290 = vmatpush1.bf16.msra.mxu1 %v6336_v32  ;;  %v2533_v57 = vadd.f32 1.0, %v6722_v46  ;;  %v2545_v62 = vmul.f32 %v2521_v40, %v2353_v5  ;;  %v6389_v32 = vld [vmem:[%s8864_s3 + $0x1b4] ss:$12 sps:$4 sm:$0xff]   ;;  %v6362_v5 = vld [vmem:[%s8862_s1 + $0x68c] ss:$48 sps:$4 sm:$0xff]  }
 0x150   :  { %2291 = vmatprep.subr.bf16.mxu1 %v6344_v35  ;;  %v2534_v61 = vadd.f32 1.0, %v6724_v56  ;;  %v2546_v6 = vmul.f32 %v2522_v49, %v2354_v48  ;;  %v6387_v35 = vld [vmem:[%s8864_s3 + $0x1b0] ss:$12 sps:$4 sm:$0xff]   ;;  %v6390_v40 = vld [vmem:[%s8864_s3 + $0x1c8] ss:$12 sps:$4 sm:$0xff]   ;;  %v2358_v56 = vmul.f32 0.5, %v7829_v42 }
 0x151   :  { %v2557_v1 = vmul.f32 %v2533_v57, %v2365_v51  ;;  %v6360_v46 = vld [vmem:[%s8862_s1 + $0x688] ss:$48 sps:$4 sm:$0xff]   ;;  %v6365_v49 = vld [vmem:[%s8862_s1 + $0x6ec] ss:$48 sps:$4 sm:$0xff]   ;;  %v2370_v57 = vmul.f32 0.5, %v7842_v16 }
 0x152   :  { %v2558_v8 = vmul.f32 %v2534_v61, %v2366_v60  ;;  %v6363_v60 = vld [vmem:[%s8862_s1 + $0x6e8] ss:$48 sps:$4 sm:$0xff]   ;;  %v6368_v42 = vld [vmem:[%s8862_s1 + $0x74c] ss:$48 sps:$4 sm:$0xff]  }
 0x153   :  { %2292 = vmatpush1.bf16.msra.mxu1 %v6342_v47  ;;  %v7857_v9 = vpack.c.bf16 %v2557_v1, %v2545_v62  ;;  %v2357_v47 = vmul.f32 0.5, %v7826_v36  ;;  %v6726_v48 = vpop.eup %6725  ;;  %v2369_v36 = vmul.f32 0.5, %v7837_v52  ;;  %v6400_v16 = vld [vmem:[%s8864_s3 + $0x1f8] ss:$12 sps:$4 sm:$0xff]   ;;  %v6407_v1 = vld [vmem:[%s8864_s3 + $0x214] ss:$12 sps:$4 sm:$0xff]  }
 0x154   :  { %2293 = vmatprep.subr.bf16.mxu1 %v6350_v54  ;;  %v7861_v13 = vpack.c.bf16 %v2558_v8, %v2546_v6  ;;  %v6728_v53 = vpop.eup %6727  ;;  %v2525_v51 = vadd.f32 1.0, %v6726_v48 }
 0x155   :  { %v2526_v59 = vadd.f32 1.0, %v6728_v53  ;;  %v6730_v54 = vpop.eup %6729 }
 0x156   :  { %4550 = vmatprep.mubr.bf16.mxu0 %v7861_v13  ;;  %v2537_v52 = vadd.f32 1.0, %v6730_v54  ;;  %v2549_v61 = vmul.f32 %v2525_v51, %v2357_v47 }
 0x157   :  { %2294 = vmatpush1.bf16.msra.mxu1 %v6348_v4  ;;  %4551 = vmatmul.mubr.bf16.vlgmr.msra.gmra.mrb[8].mxu0 %v7857_v9  ;;  %v2550_v0 = vmul.f32 %v2526_v59, %v2358_v56  ;;  %v6371_v4 = vld [vmem:[%s8862_s1 + $0x7ac] ss:$48 sps:$4 sm:$0xff]  }
 0x158   :  { %2295 = vmatprep.subr.bf16.mxu1 %v6353_v14  ;;  %4562 = vmatpush1.bf16.msra.mxu0 %v6375_v17  ;;  %v2561_v58 = vmul.f32 %v2537_v52, %v2369_v36  ;;  %v6410_v14 = vld [vmem:[%s8864_s3 + $0x228] ss:$12 sps:$4 sm:$0xff]  }
 0x159   :  { %4563 = vmatprep.subr.bf16.mxu0 %v6383_v21  ;;  %v6372_v17 = vld [vmem:[%s8862_s1 + $0x808] ss:$48 sps:$4 sm:$0xff]  }
 0x15a   :  { %v7950_v6 = vpack.c.bf16 %v2561_v58, %v2549_v61  ;;  %v6422_v21 = vld [vmem:[%s8864_s3 + $0x25c] ss:$12 sps:$4 sm:$0xff]  }
 0x15b   :  { %2296 = vmatpush1.bf16.msra.mxu1 %v6351_v22  ;;  %v6386_v22 = vld [vmem:[%s8862_s1 + $0x8cc] ss:$48 sps:$4 sm:$0xff]  }
 0x15c   :  { %2297 = vmatprep.subr.bf16.mxu1 %v6356_v28  ;;  %4564 = vmatpush1.bf16.msra.mxu0 %v6381_v29 }
 0x15d   :  { %4565 = vmatprep.subr.bf16.mxu0 %v6389_v32 }
 0x15f   :  { %2298 = vmatpush1.bf16.msra.mxu1 %v6354_v33 }
 0x160   :  { %2310 = vmatprep.subr.bf16.mxu1 %v6359_v25  ;;  %4566 = vmatpush1.bf16.msra.mxu0 %v6387_v35 }
 0x161   :  { %4567 = vmatprep.subr.bf16.mxu0 %v6392_v38 }
 0x162   :  { %2300 = vmatmul.mubr.bf16.vlgmr.msra.gmra.mrb[12].mxu1 %v7632_v7  ;;  %v6402_v7 = vld [vmem:[%s8864_s3 + $0x1fc] ss:$12 sps:$4 sm:$0xff]  }
 0x163   :  { %2311 = vmatpush1.bf16.msra.mxu1 %v6357_v37  ;;  %2342 = vmatprep.mubr.bf16.mxu1 %v6797_v63  ;;  %v6732_v63 = vpop.eup %6731 }
 0x164   :  { %2312 = vmatprep.subr.bf16.mxu1 %v6362_v5  ;;  %4568 = vmatpush1.bf16.msra.mxu0 %v6390_v40  ;;  %v2538_v62 = vadd.f32 1.0, %v6732_v63 }
 0x165   :  { %4569 = vmatprep.subr.bf16.mxu0 %v6397_v45 }
 0x166   :  { %v2562_v3 = vmul.f32 %v2538_v62, %v2370_v57 }
 0x167   :  { %2313 = vmatpush1.bf16.msra.mxu1 %v6360_v46 }
 0x168   :  { %2314 = vmatprep.subr.bf16.mxu1 %v6365_v49  ;;  %4570 = vmatpush1.bf16.msra.mxu0 %v6395_v50  ;;  %v7952_v8 = vpack.c.bf16 %v2562_v3, %v2550_v0 }
 0x169   :  { %4571 = vmatprep.subr.bf16.mxu0 %v6402_v7 }
 0x16b   :  { %2315 = vmatpush1.bf16.msra.mxu1 %v6363_v60 }
 0x16c   :  { %2316 = vmatprep.subr.bf16.mxu1 %v6368_v42  ;;  %4572 = vmatpush1.bf16.msra.mxu0 %v6400_v16 }
 0x16d   :  { %4573 = vmatprep.subr.bf16.mxu0 %v6407_v1 }
 0x16f   :  { %2317 = vmatpush1.bf16.msra.mxu1 %v6366_v2 }
 0x170   :  { %2318 = vmatprep.subr.bf16.mxu1 %v6371_v4  ;;  %4574 = vmatpush1.bf16.msra.mxu0 %v6405_v55 }
 0x171   :  { %4575 = vmatprep.subr.bf16.mxu0 %v6412_v10 }
 0x173   :  { %2319 = vmatpush1.bf16.msra.mxu1 %v6369_v11 }
 0x174   :  { %2320 = vmatprep.subr.bf16.mxu1 %v6374_v12  ;;  %4576 = vmatpush1.bf16.msra.mxu0 %v6410_v14 }
 0x175   :  { %4577 = vmatprep.subr.bf16.mxu0 %v6417_v15 }
 0x177   :  { %2321 = vmatpush1.bf16.msra.mxu1 %v6372_v17 }
 0x178   :  { %2322 = vmatprep.subr.bf16.mxu1 %v6380_v18  ;;  %4578 = vmatpush1.bf16.msra.mxu0 %v6415_v19 }
 0x179   :  { %4579 = vmatprep.subr.bf16.mxu0 %v6422_v21 }
 0x17b   :  { %2323 = vmatpush1.bf16.msra.mxu1 %v6378_v20 }
 0x17c   :  { %11 = vsyncpa [#allocation3], 0  ;;  %2324 = vmatprep.subr.bf16.mxu1 %v6386_v22  ;;  %v6393_v27 = vld [vmem:[%s8864_s3 + $0xc8] ss:$12 sps:$4 sm:$0xff]   ;;  %4580 = vmatpush1.bf16.msra.mxu0 %v6420_v23  ;;  %v6425_v28 = vld [vmem:[%s8864_s3 + $0x270] ss:$12 sps:$4 sm:$0xff]  }
 0x17d   :  { %4581 = vmatprep.subr.bf16.mxu0 %v6427_v24  ;;  %v6432_v29 = vld [vmem:[%s8864_s3 + $0x28c] ss:$12 sps:$4 sm:$0xff]   ;;  %v6394_v30 = vld [vmem:[%s8864_s3 + $0x8] ss:$12 sps:$4 sm:$0xff]   ;;  %v6437_v33 = vld [vmem:[%s8864_s3 + $0x2a4] ss:$12 sps:$4 sm:$0xff]  }
 0x17e   :  { %v6398_v31 = vld [vmem:[%s8864_s3 + $0xe0] ss:$12 sps:$4 sm:$0xff]   ;;  %v6430_v32 = vld [vmem:[%s8864_s3 + $0x288] ss:$12 sps:$4 sm:$0xff]   ;;  %v6403_v35 = vld [vmem:[%s8864_s3 + $0xf8] ss:$12 sps:$4 sm:$0xff]  }
 0x17f   :  { %2325 = vmatpush1.bf16.msra.mxu1 %v6384_v26  ;;  %v6399_v25 = vld [vmem:[%s8864_s3 + $0x20] ss:$12 sps:$4 sm:$0xff]   ;;  %v6408_v38 = vld [vmem:[%s8864_s3 + $0x110] ss:$12 sps:$4 sm:$0xff]   ;;  %v6440_v5 = vld [vmem:[%s8864_s3 + $0x2b8] ss:$12 sps:$4 sm:$0xff]  }
 0x180   :  { %5689 = vmatprep.subr.bf16.mxu1 %v6393_v27  ;;  %4582 = vmatpush1.bf16.msra.mxu0 %v6425_v28  ;;  %v6435_v37 = vld [vmem:[%s8864_s3 + $0x2a0] ss:$12 sps:$4 sm:$0xff]   ;;  %v6409_v45 = vld [vmem:[%s8864_s3 + $0x50] ss:$12 sps:$4 sm:$0xff]   ;;  %v6413_v46 = vld [vmem:[%s8864_s3 + $0x128] ss:$12 sps:$4 sm:$0xff]  }
 0x181   :  { %4583 = vmatprep.subr.bf16.mxu0 %v6432_v29  ;;  %v6447_v40 = vld [vmem:[%s8864_s3 + $0x2d4] ss:$12 sps:$4 sm:$0xff]   ;;  %v6445_v47 = vld [vmem:[%s8864_s3 + $0x2d0] ss:$12 sps:$4 sm:$0xff]   ;;  %v6452_v48 = vld [vmem:[%s8864_s3 + $0x2ec] ss:$12 sps:$4 sm:$0xff]  }
 0x182   :  { %2343 = vmatmul.mubr.bf16.vlgmr.msra.gmra.mrb[12].mxu1 %v7714_v34  ;;  %v6442_v34 = vld [vmem:[%s8864_s3 + $0x2bc] ss:$12 sps:$4 sm:$0xff]   ;;  %v8059_v49 = vsub.s32 2, %v7727_v39  ;;  %v335_v53 = vsub.s32 3, %v7727_v39  ;;  %v6418_v56 = vld [vmem:[%s8864_s3 + $0x140] ss:$12 sps:$4 sm:$0xff]  }
 0x183   :  { %5690 = vmatpush3.bf16.msra.mxu1 %v6394_v30  ;;  %4808 = vmatprep.mubr.bf16.mxu1 %v7861_v13  ;;  %v6404_v13 = vld [vmem:[%s8864_s3 + $0x38] ss:$12 sps:$4 sm:$0xff]   ;;  %v6414_v50 = vld [vmem:[%s8864_s3 + $0x68] ss:$12 sps:$4 sm:$0xff]   ;;  %v6419_v59 = vld [vmem:[%s8864_s3 + $0x80] ss:$12 sps:$4 sm:$0xff]  }
 0x184   :  { %5691 = vmatprep.subr.bf16.mxu1 %v6398_v31  ;;  %4584 = vmatpush1.bf16.msra.mxu0 %v6430_v32  ;;  %v6450_v51 = vld [vmem:[%s8864_s3 + $0x2e8] ss:$12 sps:$4 sm:$0xff]   ;;  %v6457_v36 = vld [vmem:[%s8864_s3 + $0x304] ss:$12 sps:$4 sm:$0xff]   ;;  %v332_v7 = vrot.slane %v7744_v43, %v8059_v49  ;;  %v336_v57 = vrot.slane %v7744_v43, %v335_v53  ;;  %v6438_v27 = vld [vmem:[%s8864_s3 + $0x260] ss:$12 sps:$4 sm:$0xff]  }
 0x185   :  { %4585 = vmatprep.subr.bf16.mxu0 %v6437_v33  ;;  %v6423_v54 = vld [vmem:[%s8864_s3 + $0x158] ss:$12 sps:$4 sm:$0xff]   ;;  %v6428_v1 = vld [vmem:[%s8864_s3 + $0x170] ss:$12 sps:$4 sm:$0xff]   ;;  %v6433_v15 = vld [vmem:[%s8864_s3 + $0x248] ss:$12 sps:$4 sm:$0xff]  }
 0x186   :  { %v6424_v43 = vld [vmem:[%s8864_s3 + $0x98] ss:$12 sps:$4 sm:$0xff]   ;;  %v6429_v11 = vld [vmem:[%s8864_s3 + $0xb0] ss:$12 sps:$4 sm:$0xff]   ;;  %v6434_v23 = vld [vmem:[%s8864_s3 + $0x188] ss:$12 sps:$4 sm:$0xff]  }
 0x187   :  { %5692 = vmatpush3.bf16.msra.mxu1 %v6399_v25  ;;  %v6439_v32 = vld [vmem:[%s8864_s3 + $0x1a0] ss:$12 sps:$4 sm:$0xff]   ;;  %v6443_v33 = vld [vmem:[%s8864_s3 + $0x278] ss:$12 sps:$4 sm:$0xff]   ;;  %v8137_v25 = vld [vmem:[%s8863_s2 + $0x8] sm:$0xf] }
 0x188   :  { %5693 = vmatprep.subr.bf16.mxu1 %v6403_v35  ;;  %4586 = vmatpush1.bf16.msra.mxu0 %v6435_v37  ;;  %v6448_v35 = vld [vmem:[%s8864_s3 + $0x290] ss:$12 sps:$4 sm:$0xff]   ;;  %v356_v37 = vrot.slane %v8137_v25, %v7736_v41  ;;  %s6798_s13 = smov [#allocation2]  }
 0x189   :  { %4587 = vmatprep.subr.bf16.mxu0 %v6442_v34  ;;  %v360_v34 = vrot.slane %v8137_v25, %v7747_v44  ;;  %s5099_s14 = sshll.u32 %s6798_s13, 4  ;;  %s5100_s14 = int_to_ptr.vmem [resolvable:$true] %s5099_s14 }
 0x18a   :  { %p6778_p1 = scmp.lt.s32.totalorder %s5100_s14, %s5100_s14 }
 0x18b   :  { %5694 = vmatpush3.bf16.msra.mxu1 %v6404_v13  ;;  %v6449_v13 = vld [vmem:[%s8864_s3 + $0x1d0] ss:$12 sps:$4 sm:$0xff]  }
 0x18c   :  { %5695 = vmatprep.subr.bf16.mxu1 %v6408_v38  ;;  %4588 = vmatpush1.bf16.msra.mxu0 %v6440_v5 }
 0x18d   :  { %4589 = vmatprep.subr.bf16.mxu0 %v6447_v40  ;;  %v6453_v40 = vld [vmem:[%s8864_s3 + $0x2a8] ss:$12 sps:$4 sm:$0xff]  }
 0x18f   :  { %5696 = vmatpush3.bf16.msra.mxu1 %v6409_v45 }
 0x190   :  { %5697 = vmatprep.subr.bf16.mxu1 %v6413_v46  ;;  %4590 = vmatpush1.bf16.msra.mxu0 %v6445_v47 }
 0x191   :  { %4591 = vmatprep.subr.bf16.mxu0 %v6452_v48 }
 0x193   :  { %5698 = vmatpush3.bf16.msra.mxu1 %v6414_v50 }
 0x194   :  { %5699 = vmatprep.subr.bf16.mxu1 %v6418_v56  ;;  %4592 = vmatpush1.bf16.msra.mxu0 %v6450_v51 }
 0x195   :  { %v2000_v60 = vpop.f32.mrb[4].mxu1  ;;  %4604 = vmatprep.subr.bf16.mxu0 %v6457_v36 }
 0x196   :  { %v8085_v63 = vadd.f32 %v2000_v60, %v332_v7  ;;  %v2002_v42 = vpop.f32.mrb[5].mxu1 }
 0x197   :  { %v8087_v52 = vadd.f32 %v2002_v42, %v336_v57  ;;  %v2004_v61 = vpop.f32.mrb[6].mxu1  ;;  %5700 = vmatpush3.bf16.msra.mxu1 %v6419_v59 }
 0x198   :  { %v2379_v62 = vmul.f32 %v8085_v63, %v8085_v63  ;;  %v8094_v0 = vadd.f32 %v2004_v61, %v332_v7  ;;  %v2006_v16 = vpop.f32.mrb[7].mxu1  ;;  %5701 = vmatprep.subr.bf16.mxu1 %v6423_v54  ;;  %v2355_v48 = vmul.f32 0.5, %v8085_v63 }
 0x199   :  { %v2380_v58 = vmul.f32 %v8087_v52, %v8087_v52  ;;  %v8101_v2 = vadd.f32 %v2006_v16, %v336_v57  ;;  %v2356_v7 = vmul.f32 0.5, %v8087_v52 }
 0x19a   :  { %v2403_v3 = vmul.f32 %v8085_v63, %v2379_v62  ;;  %v2391_v4 = vmul.f32 %v8094_v0, %v8094_v0  ;;  %v2367_v61 = vmul.f32 0.5, %v8094_v0 }
 0x19b   :  { %v2404_v55 = vmul.f32 %v8087_v52, %v2380_v58  ;;  %v2392_v10 = vmul.f32 %v8101_v2, %v8101_v2  ;;  %5702 = vmatpush3.bf16.msra.mxu1 %v6424_v43  ;;  %v2368_v16 = vmul.f32 0.5, %v8101_v2  ;;  %v6458_v58 = vld [vmem:[%s8864_s3 + $0x2c0] ss:$12 sps:$4 sm:$0xff]  }
 0x19c   :  { %v2427_v12 = vmul.f32 0.044715, %v2403_v3  ;;  %v2415_v14 = vmul.f32 %v8094_v0, %v2391_v4  ;;  %5703 = vmatprep.subr.bf16.mxu1 %v6428_v1  ;;  %v2258_v38 = vpop.f32.mrb[4].mxu0 }
 0x19d   :  { %v2428_v17 = vmul.f32 0.044715, %v2404_v55  ;;  %v2416_v18 = vmul.f32 %v8101_v2, %v2392_v10  ;;  %v8155_v45 = vadd.f32 %v2258_v38, %v356_v37  ;;  %v2260_v46 = vpop.f32.mrb[5].mxu0 }
 0x19e   :  { %v2451_v19 = vadd.f32 %v8085_v63, %v2427_v12  ;;  %v2439_v20 = vmul.f32 0.044715, %v2415_v14  ;;  %v8158_v56 = vadd.f32 %v2260_v46, %v360_v34  ;;  %v2262_v51 = vpop.f32.mrb[6].mxu0  ;;  %v6454_v63 = vld [vmem:[%s8864_s3 + $0x1e8] ss:$12 sps:$4 sm:$0xff]  }
 0x19f   :  { %v2452_v21 = vadd.f32 %v8087_v52, %v2428_v17  ;;  %v2440_v22 = vmul.f32 0.044715, %v2416_v18  ;;  %5704 = vmatpush3.bf16.msra.mxu1 %v6429_v11  ;;  %v2385_v59 = vmul.f32 %v8155_v45, %v8155_v45  ;;  %v8163_v54 = vadd.f32 %v2262_v51, %v356_v37  ;;  %v2264_v60 = vpop.f32.mrb[7].mxu0  ;;  %v6459_v17 = vld [vmem:[%s8864_s3 + $0x200] ss:$12 sps:$4 sm:$0xff]  }
 0x1a0   :  { %v2475_v24 = vmul.f32 0.7978846, %v2451_v19  ;;  %v2463_v26 = vadd.f32 %v8094_v0, %v2439_v20  ;;  %5711 = vmatprep.subr.bf16.mxu1 %v6433_v15  ;;  %v2386_v62 = vmul.f32 %v8158_v56, %v8158_v56  ;;  %v8171_v52 = vadd.f32 %v2264_v60, %v360_v34  ;;  %v6468_v37 = vld [vmem:[%s8864_s3 + $0x2f0] ss:$12 sps:$4 sm:$0xff]   ;;  %v6467_v34 = vld [vmem:[%s8864_s3 + $0x334] ss:$12 sps:$4 sm:$0xff]  }
 0x1a1   :  { %v2476_v28 = vmul.f32 0.7978846, %v2452_v21  ;;  %v2464_v29 = vadd.f32 %v8101_v2, %v2440_v22  ;;  %v2409_v3 = vmul.f32 %v8155_v45, %v2385_v59  ;;  %v2397_v10 = vmul.f32 %v8163_v54, %v8163_v54  ;;  %v6455_v22 = vld [vmem:[%s8864_s3 + $0x300] ss:$12 sps:$4 sm:$0xff]   ;;  %v6473_v46 = vld [vmem:[%s8864_s3 + $0x3c8] ss:$12 sps:$4 sm:$0xff]  }
 0x1a2   :  { %6733 = vtanh.f32 %v2475_v24  ;;  %v2487_v30 = vmul.f32 0.7978846, %v2463_v26  ;;  %4809 = vmatmul.mubr.bf16.vlgmr.msra.gmra.mrb[16].mxu1 %v7857_v9  ;;  %v6444_v9 = vld [vmem:[%s8864_s3 + $0x1b8] ss:$12 sps:$4 sm:$0xff]   ;;  %v2410_v55 = vmul.f32 %v8158_v56, %v2386_v62  ;;  %v2398_v11 = vmul.f32 %v8171_v52, %v8171_v52  ;;  %v6478_v51 = vld [vmem:[%s8864_s3 + $0x3e0] ss:$12 sps:$4 sm:$0xff]  }
 0x1a3   :  { %6735 = vtanh.f32 %v2476_v28  ;;  %v2488_v31 = vmul.f32 0.7978846, %v2464_v29  ;;  %5712 = vmatpush3.bf16.msra.mxu1 %v6434_v23  ;;  %v2433_v2 = vmul.f32 0.044715, %v2409_v3  ;;  %v2421_v19 = vmul.f32 %v8163_v54, %v2397_v10  ;;  %v6462_v23 = vld [vmem:[%s8864_s3 + $0x31c] ss:$12 sps:$4 sm:$0xff]  }
 0x1a4   :  { %6737 = vtanh.f32 %v2487_v30  ;;  %5713 = vmatprep.subr.bf16.mxu1 %v6438_v27  ;;  %v2434_v18 = vmul.f32 0.044715, %v2410_v55  ;;  %v2422_v20 = vmul.f32 %v8171_v52, %v2398_v11  ;;  %v6463_v26 = vld [vmem:[%s8864_s3 + $0x2d8] ss:$12 sps:$4 sm:$0xff]   ;;  %v6479_v60 = vld [vmem:[%s8864_s3 + $0x320] ss:$12 sps:$4 sm:$0xff]  }
 0x1a5   :  { %6739 = vtanh.f32 %v2488_v31  ;;  %v2457_v24 = vadd.f32 %v8155_v45, %v2433_v2  ;;  %v2445_v28 = vmul.f32 0.044715, %v2421_v19  ;;  %v6464_v31 = vld [vmem:[%s8864_s3 + $0x218] ss:$12 sps:$4 sm:$0xff]   ;;  %v6487_v11 = vld [vmem:[%s8864_s3 + $0x394] ss:$12 sps:$4 sm:$0xff]  }
 0x1a6   :  { %v2458_v27 = vadd.f32 %v8158_v56, %v2434_v18  ;;  %v2446_v29 = vmul.f32 0.044715, %v2422_v20  ;;  %v6484_v3 = vld [vmem:[%s8864_s3 + $0x338] ss:$12 sps:$4 sm:$0xff]   ;;  %v6489_v2 = vld [vmem:[%s8864_s3 + $0x350] ss:$12 sps:$4 sm:$0xff]  }
 0x1a7   :  { %5714 = vmatpush3.bf16.msra.mxu1 %v6439_v32  ;;  %v2481_v30 = vmul.f32 0.7978846, %v2457_v24  ;;  %v6493_v18 = vld [vmem:[%s8864_s3 + $0x428] ss:$12 sps:$4 sm:$0xff]   ;;  %v6492_v19 = vld [vmem:[%s8864_s3 + $0x3ac] ss:$12 sps:$4 sm:$0xff]  }
 0x1a8   :  { %5715 = vmatprep.subr.bf16.mxu1 %v6443_v33  ;;  %v2482_v32 = vmul.f32 0.7978846, %v2458_v27  ;;  %v2469_v33 = vadd.f32 %v8163_v54, %v2445_v28  ;;  %v6494_v20 = vld [vmem:[%s8864_s3 + $0x368] ss:$12 sps:$4 sm:$0xff]   ;;  %v6499_v24 = vld [vmem:[%s8864_s3 + $0x380] ss:$12 sps:$4 sm:$0xff]  }
 0x1a9   :  { %6741 = vtanh.f32 %v2481_v30  ;;  %v6503_v27 = vld [vmem:[%s8864_s3 + $0x458] ss:$12 sps:$4 sm:$0xff]   ;;  %v6502_v28 = vld [vmem:[%s8864_s3 + $0x3dc] ss:$12 sps:$4 sm:$0xff]  }
 0x1aa   :  { %6743 = vtanh.f32 %v2482_v32  ;;  %v6500_v30 = vld [vmem:[%s8864_s3 + $0x3d8] ss:$12 sps:$4 sm:$0xff]   ;;  %v6507_v32 = vld [vmem:[%s8864_s3 + $0x3f4] ss:$12 sps:$4 sm:$0xff]  }
 0x1ab   :  { %5716 = vmatpush3.bf16.msra.mxu1 %v6444_v9  ;;  %v2470_v9 = vadd.f32 %v8171_v52, %v2446_v29  ;;  %v6504_v29 = vld [vmem:[%s8864_s3 + $0x398] ss:$12 sps:$4 sm:$0xff]  }
 0x1ac   :  { %v6734_v5 = vpop.eup %6733  ;;  %5717 = vmatprep.subr.bf16.mxu1 %v6448_v35  ;;  %v6460_v35 = vld [vmem:[%s8864_s3 + $0x318] ss:$12 sps:$4 sm:$0xff]  }
 0x1ad   :  { %v6736_v47 = vpop.eup %6735  ;;  %v2523_v50 = vadd.f32 1.0, %v6734_v5  ;;  %v2494_v38 = vmul.f32 0.7978846, %v2470_v9  ;;  %v6469_v5 = vld [vmem:[%s8864_s3 + $0x230] ss:$12 sps:$4 sm:$0xff]  }
 0x1ae   :  { %v6738_v36 = vpop.eup %6737  ;;  %v2524_v57 = vadd.f32 1.0, %v6736_v47  ;;  %v6472_v47 = vld [vmem:[%s8864_s3 + $0x34c] ss:$12 sps:$4 sm:$0xff]   ;;  %v6505_v9 = vld [vmem:[%s8864_s3 + $0x3f0] ss:$12 sps:$4 sm:$0xff]  }
 0x1af   :  { %v6740_v42 = vpop.eup %6739  ;;  %5718 = vmatpush3.bf16.msra.mxu1 %v6449_v13  ;;  %v2535_v43 = vadd.f32 1.0, %v6738_v36  ;;  %v2547_v0 = vmul.f32 %v2523_v50, %v2355_v48  ;;  %v2493_v13 = vmul.f32 0.7978846, %v2469_v33  ;;  %v6474_v48 = vld [vmem:[%s8864_s3 + $0x308] ss:$12 sps:$4 sm:$0xff]  }
 0x1b0   :  { %5719 = vmatprep.subr.bf16.mxu1 %v6453_v40  ;;  %v2536_v1 = vadd.f32 1.0, %v6740_v42  ;;  %v2548_v12 = vmul.f32 %v2524_v57, %v2356_v7  ;;  %v6465_v40 = vld [vmem:[%s8864_s3 + $0x330] ss:$12 sps:$4 sm:$0xff]   ;;  %v6470_v50 = vld [vmem:[%s8864_s3 + $0x348] ss:$12 sps:$4 sm:$0xff]   ;;  %v2361_v57 = vmul.f32 0.5, %v8155_v45 }
 0x1b1   :  { %v2559_v4 = vmul.f32 %v2535_v43, %v2367_v61  ;;  %6745 = vtanh.f32 %v2493_v13  ;;  %v6477_v36 = vld [vmem:[%s8864_s3 + $0x364] ss:$12 sps:$4 sm:$0xff]   ;;  %v2362_v42 = vmul.f32 0.5, %v8158_v56  ;;  %v2373_v43 = vmul.f32 0.5, %v8163_v54  ;;  %v6482_v56 = vld [vmem:[%s8864_s3 + $0x37c] ss:$12 sps:$4 sm:$0xff]  }
 0x1b2   :  { %v2560_v14 = vmul.f32 %v2536_v1, %v2368_v16  ;;  %6747 = vtanh.f32 %v2494_v38  ;;  %v6483_v45 = vld [vmem:[%s8864_s3 + $0x3f8] ss:$12 sps:$4 sm:$0xff]   ;;  %v2374_v16 = vmul.f32 0.5, %v8171_v52  ;;  %v6488_v52 = vld [vmem:[%s8864_s3 + $0x410] ss:$12 sps:$4 sm:$0xff]  }
 0x1b3   :  { %5720 = vmatpush3.bf16.msra.mxu1 %v6454_v63  ;;  %v2571_v15 = vpack.c.bf16 %v2559_v4, %v2547_v0  ;;  %v6742_v7 = vpop.eup %6741  ;;  %v6475_v63 = vld [vmem:[%s8864_s3 + $0x360] ss:$12 sps:$4 sm:$0xff]   ;;  %v6480_v54 = vld [vmem:[%s8864_s3 + $0x378] ss:$12 sps:$4 sm:$0xff]   ;;  %v6509_v33 = vld [vmem:[%s8864_s3 + $0x3b0] ss:$12 sps:$4 sm:$0xff]  }
 0x1b4   :  { %v2572_v21 = vpack.c.bf16 %v2560_v14, %v2548_v12  ;;  %5721 = vmatprep.subr.bf16.mxu1 %v6458_v58  ;;  %v6744_v59 = vpop.eup %6743  ;;  %v2529_v61 = vadd.f32 1.0, %v6742_v7  ;;  %v6510_v13 = vld [vmem:[%s8864_s3 + $0x408] ss:$12 sps:$4 sm:$0xff]   ;;  %v6533_v38 = vld [vmem:[%s8864_s3 + $0x560] ss:$12 sps:$4 sm:$0xff]  }
 0x1b5   :  { %v6521_v7 = vld [vmem:[%s8864_s3 + $0x454] ss:$12 sps:$4 sm:$0xff]  }
 0x1b6   :  { %4593 = vmatprep.mubr.bf16.mxu0 %v2572_v21  ;;  %4849 = vmatprep.mubr.bf16.mxu1 %v2572_v21  ;;  %v2553_v0 = vmul.f32 %v2529_v61, %v2361_v57  ;;  %v6490_v21 = vld [vmem:[%s8864_s3 + $0x3a8] ss:$12 sps:$4 sm:$0xff]   ;;  %v6544_v57 = vld [vmem:[%s8864_s3 + $0x4d0] ss:$12 sps:$4 sm:$0xff]   ;;  %v347_v61 = vsub.s32 6, %v7727_v39 }
 0x1b7   :  { %4594 = vmatmul.mubr.bf16.vlgmr.msra.gmra.mrb[8].mxu0 %v2571_v15  ;;  %5722 = vmatpush3.bf16.msra.mxu1 %v6459_v17  ;;  %v6485_v17 = vld [vmem:[%s8864_s3 + $0x390] ss:$12 sps:$4 sm:$0xff]  }
 0x1b8   :  { %4605 = vmatpush1.bf16.msra.mxu0 %v6455_v22  ;;  %4636 = vmatprep.mubr.bf16.mxu0 %v7952_v8  ;;  %v6498_v22 = vld [vmem:[%s8864_s3 + $0x440] ss:$12 sps:$4 sm:$0xff]  }
 0x1b9   :  { %4606 = vmatprep.subr.bf16.mxu0 %v6462_v23  ;;  %5723 = vmatprep.subr.bf16.mxu1 %v6463_v26  ;;  %v6497_v23 = vld [vmem:[%s8864_s3 + $0x3c4] ss:$12 sps:$4 sm:$0xff]   ;;  %v6495_v26 = vld [vmem:[%s8864_s3 + $0x3c0] ss:$12 sps:$4 sm:$0xff]  }
 0x1bb   :  { %5724 = vmatpush3.bf16.msra.mxu1 %v6464_v31  ;;  %v6746_v62 = vpop.eup %6745  ;;  %v6508_v31 = vld [vmem:[%s8864_s3 + $0x470] ss:$12 sps:$4 sm:$0xff]  }
 0x1bc   :  { %4607 = vmatpush1.bf16.msra.mxu0 %v6460_v35  ;;  %5725 = vmatprep.subr.bf16.mxu1 %v6468_v37  ;;  %v6748_v1 = vpop.eup %6747  ;;  %v2541_v58 = vadd.f32 1.0, %v6746_v62  ;;  %v6528_v35 = vld [vmem:[%s8864_s3 + $0x548] ss:$12 sps:$4 sm:$0xff]   ;;  %v6512_v37 = vld [vmem:[%s8864_s3 + $0x40c] ss:$12 sps:$4 sm:$0xff]  }
 0x1bd   :  { %4608 = vmatprep.subr.bf16.mxu0 %v6467_v34  ;;  %v2542_v4 = vadd.f32 1.0, %v6748_v1  ;;  %v6529_v34 = vld [vmem:[%s8864_s3 + $0x488] ss:$12 sps:$4 sm:$0xff]   ;;  %v6527_v62 = vld [vmem:[%s8864_s3 + $0x484] ss:$12 sps:$4 sm:$0xff]  }
 0x1be   :  { %v2565_v10 = vmul.f32 %v2541_v58, %v2373_v43  ;;  %v6522_v43 = vld [vmem:[%s8864_s3 + $0x468] ss:$12 sps:$4 sm:$0xff]   ;;  %v6554_v58 = vld [vmem:[%s8864_s3 + $0x500] ss:$12 sps:$4 sm:$0xff]  }
 0x1bf   :  { %5726 = vmatpush3.bf16.msra.mxu1 %v6469_v5  ;;  %v2566_v12 = vmul.f32 %v2542_v4, %v2374_v16  ;;  %v6515_v5 = vld [vmem:[%s8864_s3 + $0x424] ss:$12 sps:$4 sm:$0xff]  }
 0x1c0   :  { %4609 = vmatpush1.bf16.msra.mxu0 %v6465_v40  ;;  %5733 = vmatprep.subr.bf16.mxu1 %v6473_v46  ;;  %v8267_v14 = vpack.c.bf16 %v2565_v10, %v2553_v0  ;;  %v6534_v40 = vld [vmem:[%s8864_s3 + $0x4a0] ss:$12 sps:$4 sm:$0xff]  }
 0x1c1   :  { %4610 = vmatprep.subr.bf16.mxu0 %v6472_v47  ;;  %v6513_v46 = vld [vmem:[%s8864_s3 + $0x420] ss:$12 sps:$4 sm:$0xff]   ;;  %v6538_v47 = vld [vmem:[%s8864_s3 + $0x578] ss:$12 sps:$4 sm:$0xff]  }
 0x1c2   :  { %4850 = vmatmul.mubr.bf16.vlgmr.msra.gmra.mrb[20].mxu1 %v2571_v15  ;;  %v6525_v0 = vld [vmem:[%s8864_s3 + $0x480] ss:$12 sps:$4 sm:$0xff]  }
 0x1c3   :  { %5734 = vmatpush3.bf16.msra.mxu1 %v6474_v48  ;;  %4890 = vmatprep.mubr.bf16.mxu1 %v7952_v8  ;;  %v2530_v8 = vadd.f32 1.0, %v6744_v59  ;;  %v6518_v48 = vld [vmem:[%s8864_s3 + $0x43c] ss:$12 sps:$4 sm:$0xff]  }
 0x1c4   :  { %4611 = vmatpush1.bf16.msra.mxu0 %v6470_v50  ;;  %5735 = vmatprep.subr.bf16.mxu1 %v6478_v51  ;;  %v6539_v50 = vld [vmem:[%s8864_s3 + $0x4b8] ss:$12 sps:$4 sm:$0xff]   ;;  %v6519_v59 = vld [vmem:[%s8864_s3 + $0x450] ss:$12 sps:$4 sm:$0xff]  }
 0x1c5   :  { %4612 = vmatprep.subr.bf16.mxu0 %v6477_v36  ;;  %v2554_v55 = vmul.f32 %v2530_v8, %v2362_v42  ;;  %v6516_v51 = vld [vmem:[%s8864_s3 + $0x438] ss:$12 sps:$4 sm:$0xff]   ;;  %v6543_v36 = vld [vmem:[%s8864_s3 + $0x590] ss:$12 sps:$4 sm:$0xff]   ;;  %v6553_v8 = vld [vmem:[%s8864_s3 + $0x5c0] ss:$12 sps:$4 sm:$0xff]  }
 0x1c6   :  { %v6524_v42 = vld [vmem:[%s8864_s3 + $0x46c] ss:$12 sps:$4 sm:$0xff]  }
 0x1c7   :  { %5736 = vmatpush3.bf16.msra.mxu1 %v6479_v60  ;;  %v8272_v15 = vpack.c.bf16 %v2566_v12, %v2554_v55  ;;  %v6548_v60 = vld [vmem:[%s8864_s3 + $0x5a8] ss:$12 sps:$4 sm:$0xff]   ;;  %v6559_v12 = vld [vmem:[%s8864_s3 + $0x518] ss:$12 sps:$4 sm:$0xff]  }
 0x1c8   :  { %4613 = vmatpush1.bf16.msra.mxu0 %v6475_v63  ;;  %5737 = vmatprep.subr.bf16.mxu1 %v6483_v45  ;;  %v351_v63 = vsub.s32 7, %v7727_v39  ;;  %v6549_v45 = vld [vmem:[%s8864_s3 + $0x4e8] ss:$12 sps:$4 sm:$0xff]  }
 0x1c9   :  { %4614 = vmatprep.subr.bf16.mxu0 %v6482_v56  ;;  %v6772_v56 = vld [vmem:[%s8863_s2] sm:$0xff]  ;;  %v6532_v55 = vld [vmem:[%s8864_s3 + $0x49c] ss:$12 sps:$4 sm:$0xff]  }
 0x1ca   :  { %v348_v16 = vrot.slane %v6772_v56, %v347_v61  ;;  %v352_v1 = vrot.slane %v6772_v56, %v351_v63  ;;  %v6555_v61 = vld [vmem:[%s8864_s3 + $0x510] ss:$12 sps:$4 sm:$0xff]  }
 0x1cb   :  { %5738 = vmatpush3.bf16.msra.mxu1 %v6484_v3  ;;  %v6558_v3 = vld [vmem:[%s8864_s3 + $0x5d8] ss:$12 sps:$4 sm:$0xff]  }
 0x1cc   :  { %4615 = vmatpush1.bf16.msra.mxu0 %v6480_v54  ;;  %5739 = vmatprep.subr.bf16.mxu1 %v6488_v52 }
 0x1cd   :  { %4616 = vmatprep.subr.bf16.mxu0 %v6487_v11 }
 0x1cf   :  { %5740 = vmatpush3.bf16.msra.mxu1 %v6489_v2 }
 0x1d0   :  { %4617 = vmatpush1.bf16.msra.mxu0 %v6485_v17  ;;  %5741 = vmatprep.subr.bf16.mxu1 %v6493_v18 }
 0x1d1   :  { %4618 = vmatprep.subr.bf16.mxu0 %v6492_v19  ;;  %v6530_v19 = vld [vmem:[%s8864_s3 + $0x498] ss:$12 sps:$4 sm:$0xff]  }
 0x1d3   :  { %5742 = vmatpush3.bf16.msra.mxu1 %v6494_v20 }
 0x1d4   :  { %4619 = vmatpush1.bf16.msra.mxu0 %v6490_v21  ;;  %5743 = vmatprep.subr.bf16.mxu1 %v6498_v22  ;;  %v6537_v22 = vld [vmem:[%s8864_s3 + $0x4b4] ss:$12 sps:$4 sm:$0xff]  }
 0x1d5   :  { %4620 = vmatprep.subr.bf16.mxu0 %v6497_v23 }
 0x1d7   :  { %5744 = vmatpush3.bf16.msra.mxu1 %v6499_v24 }
 0x1d8   :  { %4621 = vmatpush1.bf16.msra.mxu0 %v6495_v26  ;;  %5745 = vmatprep.subr.bf16.mxu1 %v6503_v27 }
 0x1d9   :  { %4622 = vmatprep.subr.bf16.mxu0 %v6502_v28  ;;  %v6564_v28 = vld [vmem:[%s8864_s3 + $0x530] ss:$12 sps:$4 sm:$0xff]  }
 0x1db   :  { %5746 = vmatpush3.bf16.msra.mxu1 %v6504_v29 }
 0x1dc   :  { %4623 = vmatpush1.bf16.msra.mxu0 %v6500_v30  ;;  %5747 = vmatprep.subr.bf16.mxu1 %v6508_v31  ;;  %v6535_v31 = vld [vmem:[%s8864_s3 + $0x4b0] ss:$12 sps:$4 sm:$0xff]  }
 0x1dd   :  { %4624 = vmatprep.subr.bf16.mxu0 %v6507_v32  ;;  %v6568_v32 = vld [vmem:[%s8864_s3 + $0x6c8] ss:$12 sps:$4 sm:$0xff]  }
 0x1df   :  { %5748 = vmatpush3.bf16.msra.mxu1 %v6509_v33 }
 0x1e0   :  { %4625 = vmatpush1.bf16.msra.mxu0 %v6505_v9  ;;  %5755 = vmatprep.subr.bf16.mxu1 %v6528_v35  ;;  %v6542_v35 = vld [vmem:[%s8864_s3 + $0x4cc] ss:$12 sps:$4 sm:$0xff]  }
 0x1e1   :  { %4626 = vmatprep.subr.bf16.mxu0 %v6512_v37 }
 0x1e2   :  { %4891 = vmatmul.mubr.bf16.vlgmr.msra.gmra.mrb[24].mxu1 %v7950_v6 }
 0x1e3   :  { %5756 = vmatpush3.bf16.msra.mxu1 %v6529_v34 }
 0x1e4   :  { %4627 = vmatpush1.bf16.msra.mxu0 %v6510_v13  ;;  %5757 = vmatprep.subr.bf16.mxu1 %v6533_v38 }
 0x1e5   :  { %4628 = vmatprep.subr.bf16.mxu0 %v6515_v5 }
 0x1e7   :  { %5758 = vmatpush3.bf16.msra.mxu1 %v6534_v40 }
 0x1e8   :  { %4629 = vmatpush1.bf16.msra.mxu0 %v6513_v46  ;;  %5759 = vmatprep.subr.bf16.mxu1 %v6538_v47  ;;  %v6540_v46 = vld [vmem:[%s8864_s3 + $0x4c8] ss:$12 sps:$4 sm:$0xff]  }
 0x1e9   :  { %4630 = vmatprep.subr.bf16.mxu0 %v6518_v48 }
 0x1eb   :  { %5760 = vmatpush3.bf16.msra.mxu1 %v6539_v50  ;;  %v6547_v50 = vld [vmem:[%s8864_s3 + $0x4e4] ss:$12 sps:$4 sm:$0xff]  }
 0x1ec   :  { %4631 = vmatpush1.bf16.msra.mxu0 %v6516_v51  ;;  %5761 = vmatprep.subr.bf16.mxu1 %v6543_v36 }
 0x1ed   :  { %4632 = vmatprep.subr.bf16.mxu0 %v6521_v7  ;;  %v6545_v7 = vld [vmem:[%s8864_s3 + $0x4e0] ss:$12 sps:$4 sm:$0xff]  }
 0x1ef   :  { %5762 = vmatpush3.bf16.msra.mxu1 %v6544_v57  ;;  %v6552_v57 = vld [vmem:[%s8864_s3 + $0x4fc] ss:$12 sps:$4 sm:$0xff]  }
 0x1f0   :  { %4633 = vmatpush1.bf16.msra.mxu0 %v6519_v59  ;;  %5763 = vmatprep.subr.bf16.mxu1 %v6548_v60  ;;  %v6550_v59 = vld [vmem:[%s8864_s3 + $0x4f8] ss:$12 sps:$4 sm:$0xff]   ;;  %v6557_v60 = vld [vmem:[%s8864_s3 + $0x514] ss:$12 sps:$4 sm:$0xff]  }
 0x1f1   :  { %4634 = vmatprep.subr.bf16.mxu0 %v6524_v42 }
 0x1f3   :  { %5764 = vmatpush3.bf16.msra.mxu1 %v6549_v45  ;;  %v6562_v45 = vld [vmem:[%s8864_s3 + $0x52c] ss:$12 sps:$4 sm:$0xff]  }
 0x1f4   :  { %4635 = vmatpush1.bf16.msra.mxu0 %v6522_v43  ;;  %5765 = vmatprep.subr.bf16.mxu1 %v6553_v8 }
 0x1f5   :  { %v2172_v4 = vpop.f32.mrb[8].mxu1  ;;  %4647 = vmatprep.subr.bf16.mxu0 %v6527_v62 }
 0x1f6   :  { %v8409_v54 = vadd.f32 %v2172_v4, %v348_v16  ;;  %v2174_v52 = vpop.f32.mrb[9].mxu1 }
 0x1f7   :  { %v8411_v10 = vadd.f32 %v2174_v52, %v352_v1  ;;  %4637 = vmatmul.mubr.bf16.vlgmr.msra.gmra.mrb[8].mxu0 %v7950_v6  ;;  %v2176_v11 = vpop.f32.mrb[10].mxu1  ;;  %5766 = vmatpush3.bf16.msra.mxu1 %v6554_v58  ;;  %v6563_v6 = vld [vmem:[%s8864_s3 + $0x5f0] ss:$12 sps:$4 sm:$0xff]  }
 0x1f8   :  { %v2383_v2 = vmul.f32 %v8409_v54, %v8409_v54  ;;  %v8419_v17 = vadd.f32 %v2176_v11, %v348_v16  ;;  %4648 = vmatpush1.bf16.msra.mxu0 %v6525_v0  ;;  %v2178_v18 = vpop.f32.mrb[11].mxu1  ;;  %5767 = vmatprep.subr.bf16.mxu1 %v6558_v3  ;;  %v2359_v16 = vmul.f32 0.5, %v8409_v54  ;;  %v6560_v0 = vld [vmem:[%s8864_s3 + $0x528] ss:$12 sps:$4 sm:$0xff]   ;;  %v6567_v52 = vld [vmem:[%s8864_s3 + $0x544] ss:$12 sps:$4 sm:$0xff]  }
 0x1f9   :  { %v2384_v20 = vmul.f32 %v8411_v10, %v8411_v10  ;;  %v5836_v21 = vadd.f32 %v2178_v18, %v352_v1  ;;  %4649 = vmatprep.subr.bf16.mxu0 %v6532_v55  ;;  %v2360_v3 = vmul.f32 0.5, %v8411_v10  ;;  %v6565_v18 = vld [vmem:[%s8864_s3 + $0x540] ss:$12 sps:$4 sm:$0xff]  }
 0x1fa   :  { %v2407_v23 = vmul.f32 %v8409_v54, %v2383_v2  ;;  %v2395_v24 = vmul.f32 %v8419_v17, %v8419_v17  ;;  %v2371_v1 = vmul.f32 0.5, %v8419_v17 }
 0x1fb   :  { %v2408_v26 = vmul.f32 %v8411_v10, %v2384_v20  ;;  %v2396_v27 = vmul.f32 %v5836_v21, %v5836_v21  ;;  %5768 = vmatpush3.bf16.msra.mxu1 %v6559_v12  ;;  %v2372_v4 = vmul.f32 0.5, %v5836_v21  ;;  %v6573_v20 = vld [vmem:[%s8864_s3 + $0x6e0] ss:$12 sps:$4 sm:$0xff]  }
 0x1fc   :  { %v2431_v29 = vmul.f32 0.044715, %v2407_v23  ;;  %v2419_v30 = vmul.f32 %v8419_v17, %v2395_v24  ;;  %4650 = vmatpush1.bf16.msra.mxu0 %v6530_v19  ;;  %5769 = vmatprep.subr.bf16.mxu1 %v6563_v6  ;;  %v6572_v6 = vld [vmem:[%s8864_s3 + $0x55c] ss:$12 sps:$4 sm:$0xff]   ;;  %v6577_v23 = vld [vmem:[%s8864_s3 + $0x574] ss:$12 sps:$4 sm:$0xff]  }
 0x1fd   :  { %v2432_v33 = vmul.f32 0.044715, %v2408_v26  ;;  %v2420_v9 = vmul.f32 %v5836_v21, %v2396_v27  ;;  %4651 = vmatprep.subr.bf16.mxu0 %v6537_v22  ;;  %v6574_v22 = vld [vmem:[%s8864_s3 + $0x620] ss:$12 sps:$4 sm:$0xff]   ;;  %v6578_v24 = vld [vmem:[%s8864_s3 + $0x6f8] ss:$12 sps:$4 sm:$0xff]  }
 0x1fe   :  { %v2455_v37 = vadd.f32 %v8409_v54, %v2431_v29  ;;  %v2443_v34 = vmul.f32 0.044715, %v2419_v30  ;;  %v6575_v26 = vld [vmem:[%s8864_s3 + $0x570] ss:$12 sps:$4 sm:$0xff]   ;;  %v6579_v27 = vld [vmem:[%s8864_s3 + $0x638] ss:$12 sps:$4 sm:$0xff]  }
 0x1ff   :  { %v2456_v13 = vadd.f32 %v8411_v10, %v2432_v33  ;;  %v2444_v38 = vmul.f32 0.044715, %v2420_v9  ;;  %5770 = vmatpush3.bf16.msra.mxu1 %v6564_v28  ;;  %v6569_v10 = vld [vmem:[%s8864_s3 + $0x608] ss:$12 sps:$4 sm:$0xff]   ;;  %v6582_v28 = vld [vmem:[%s8864_s3 + $0x58c] ss:$12 sps:$4 sm:$0xff]  }
 0x200   :  { %v2479_v5 = vmul.f32 0.7978846, %v2455_v37  ;;  %v2467_v40 = vadd.f32 %v8419_v17, %v2443_v34  ;;  %4652 = vmatpush1.bf16.msra.mxu0 %v6535_v31  ;;  %5777 = vmatprep.subr.bf16.mxu1 %v6568_v32  ;;  %v6583_v29 = vld [vmem:[%s8864_s3 + $0x710] ss:$12 sps:$4 sm:$0xff]   ;;  %v6580_v30 = vld [vmem:[%s8864_s3 + $0x588] ss:$12 sps:$4 sm:$0xff]  }
 0x201   :  { %v2480_v47 = vmul.f32 0.7978846, %v2456_v13  ;;  %v2468_v48 = vadd.f32 %v5836_v21, %v2444_v38  ;;  %4653 = vmatprep.subr.bf16.mxu0 %v6542_v35  ;;  %v6570_v21 = vld [vmem:[%s8864_s3 + $0x558] ss:$12 sps:$4 sm:$0xff]   ;;  %v6584_v31 = vld [vmem:[%s8864_s3 + $0x650] ss:$12 sps:$4 sm:$0xff]  }
 0x202   :  { %6749 = vtanh.f32 %v2479_v5  ;;  %v2491_v51 = vmul.f32 0.7978846, %v2467_v40  ;;  %v6587_v32 = vld [vmem:[%s8864_s3 + $0x5a4] ss:$12 sps:$4 sm:$0xff]   ;;  %v6588_v33 = vld [vmem:[%s8864_s3 + $0x728] ss:$12 sps:$4 sm:$0xff]  }
 0x203   :  { %6751 = vtanh.f32 %v2480_v47  ;;  %v2492_v36 = vmul.f32 0.7978846, %v2468_v48  ;;  %v6585_v9 = vld [vmem:[%s8864_s3 + $0x5a0] ss:$12 sps:$4 sm:$0xff]   ;;  %v6589_v35 = vld [vmem:[%s8864_s3 + $0x668] ss:$12 sps:$4 sm:$0xff]  }
 0x204   :  { %6753 = vtanh.f32 %v2491_v51  ;;  %4654 = vmatpush1.bf16.msra.mxu0 %v6540_v46  ;;  %v6592_v37 = vld [vmem:[%s8864_s3 + $0x5bc] ss:$12 sps:$4 sm:$0xff]   ;;  %v6593_v34 = vld [vmem:[%s8864_s3 + $0x740] ss:$12 sps:$4 sm:$0xff]   ;;  %v6590_v13 = vld [vmem:[%s8864_s3 + $0x5b8] ss:$12 sps:$4 sm:$0xff]  }
 0x205   :  { %6755 = vtanh.f32 %v2492_v36  ;;  %4655 = vmatprep.subr.bf16.mxu0 %v6547_v50  ;;  %v6594_v38 = vld [vmem:[%s8864_s3 + $0x680] ss:$12 sps:$4 sm:$0xff]   ;;  %v6598_v40 = vld [vmem:[%s8864_s3 + $0x758] ss:$12 sps:$4 sm:$0xff]   ;;  %v6595_v46 = vld [vmem:[%s8864_s3 + $0x5d0] ss:$12 sps:$4 sm:$0xff]  }
 0x206   :  { %v6597_v5 = vld [vmem:[%s8864_s3 + $0x5d4] ss:$12 sps:$4 sm:$0xff]   ;;  %v6599_v47 = vld [vmem:[%s8864_s3 + $0x698] ss:$12 sps:$4 sm:$0xff]   ;;  %v6603_v50 = vld [vmem:[%s8864_s3 + $0x770] ss:$12 sps:$4 sm:$0xff]  }
 0x207   :  { %v6602_v48 = vld [vmem:[%s8864_s3 + $0x5ec] ss:$12 sps:$4 sm:$0xff]   ;;  %v6600_v51 = vld [vmem:[%s8864_s3 + $0x5e8] ss:$12 sps:$4 sm:$0xff]   ;;  %v6604_v36 = vld [vmem:[%s8864_s3 + $0x6b0] ss:$12 sps:$4 sm:$0xff]  }
 0x208   :  { %4656 = vmatpush1.bf16.msra.mxu0 %v6545_v7  ;;  %v6607_v7 = vld [vmem:[%s8864_s3 + $0x604] ss:$12 sps:$4 sm:$0xff]  }
 0x209   :  { %4657 = vmatprep.subr.bf16.mxu0 %v6552_v57  ;;  %v6632_v57 = vld [vmem:[%s8864_s3 + $0x848] ss:$12 sps:$4 sm:$0xff]  }
 0x20c   :  { %v6750_v42 = vpop.eup %6749  ;;  %4658 = vmatpush1.bf16.msra.mxu0 %v6550_v59  ;;  %v6605_v59 = vld [vmem:[%s8864_s3 + $0x600] ss:$12 sps:$4 sm:$0xff]  }
 0x20d   :  { %v6752_v63 = vpop.eup %6751  ;;  %4659 = vmatprep.subr.bf16.mxu0 %v6557_v60  ;;  %v2527_v43 = vadd.f32 1.0, %v6750_v42  ;;  %v6610_v60 = vld [vmem:[%s8864_s3 + $0x61c] ss:$12 sps:$4 sm:$0xff]  }
 0x20e   :  { %v6754_v8 = vpop.eup %6753  ;;  %v2528_v62 = vadd.f32 1.0, %v6752_v63  ;;  %v6633_v42 = vld [vmem:[%s8864_s3 + $0x788] ss:$12 sps:$4 sm:$0xff]   ;;  %v6608_v63 = vld [vmem:[%s8864_s3 + $0x618] ss:$12 sps:$4 sm:$0xff]  }
 0x20f   :  { %v6756_v56 = vpop.eup %6755  ;;  %v2539_v58 = vadd.f32 1.0, %v6754_v8  ;;  %v2551_v11 = vmul.f32 %v2527_v43, %v2359_v16  ;;  %v6638_v43 = vld [vmem:[%s8864_s3 + $0x7a0] ss:$12 sps:$4 sm:$0xff]   ;;  %v6642_v8 = vld [vmem:[%s8864_s3 + $0x878] ss:$12 sps:$4 sm:$0xff]  }
 0x210   :  { %4660 = vmatpush1.bf16.msra.mxu0 %v6555_v61  ;;  %v2540_v55 = vadd.f32 1.0, %v6756_v56  ;;  %v2552_v54 = vmul.f32 %v2528_v62, %v2360_v3  ;;  %v6637_v61 = vld [vmem:[%s8864_s3 + $0x860] ss:$12 sps:$4 sm:$0xff]   ;;  %v6643_v56 = vld [vmem:[%s8864_s3 + $0x7b8] ss:$12 sps:$4 sm:$0xff]  }
 0x211   :  { %4661 = vmatprep.subr.bf16.mxu0 %v6562_v45  ;;  %v2563_v12 = vmul.f32 %v2539_v58, %v2371_v1  ;;  %v6613_v45 = vld [vmem:[%s8864_s3 + $0x634] ss:$12 sps:$4 sm:$0xff]   ;;  %v6616_v62 = vld [vmem:[%s8864_s3 + $0x64c] ss:$12 sps:$4 sm:$0xff]   ;;  %v6647_v16 = vld [vmem:[%s8864_s3 + $0x890] ss:$12 sps:$4 sm:$0xff]  }
 0x212   :  { %v2564_v2 = vmul.f32 %v2540_v55, %v2372_v4  ;;  %v6614_v1 = vld [vmem:[%s8864_s3 + $0x648] ss:$12 sps:$4 sm:$0xff]   ;;  %v6619_v58 = vld [vmem:[%s8864_s3 + $0x664] ss:$12 sps:$4 sm:$0xff]   ;;  %v6617_v4 = vld [vmem:[%s8864_s3 + $0x660] ss:$12 sps:$4 sm:$0xff]  }
 0x213   :  { %v8485_v17 = vpack.c.bf16 %v2563_v12, %v2551_v11  ;;  %v6652_v3 = vld [vmem:[%s8864_s3 + $0x8a8] ss:$12 sps:$4 sm:$0xff]   ;;  %v6657_v11 = vld [vmem:[%s8864_s3 + $0x8c0] ss:$12 sps:$4 sm:$0xff]   ;;  %v6620_v12 = vld [vmem:[%s8864_s3 + $0x678] ss:$12 sps:$4 sm:$0xff]  }
 0x214   :  { %4662 = vmatpush1.bf16.msra.mxu0 %v6560_v0  ;;  %v2576_v19 = vpack.c.bf16 %v2564_v2, %v2552_v54  ;;  %v6648_v0 = vld [vmem:[%s8864_s3 + $0x7d0] ss:$12 sps:$4 sm:$0xff]   ;;  %v6625_v54 = vld [vmem:[%s8864_s3 + $0x694] ss:$12 sps:$4 sm:$0xff]  }
 0x215   :  { %4663 = vmatprep.subr.bf16.mxu0 %v6567_v52  ;;  %v6622_v55 = vld [vmem:[%s8864_s3 + $0x67c] ss:$12 sps:$4 sm:$0xff]   ;;  %v6658_v2 = vld [vmem:[%s8864_s3 + $0x800] ss:$12 sps:$4 sm:$0xff]  }
 0x216   :  { %4679 = vmatprep.mubr.bf16.mxu0 %v2576_v19  ;;  %4931 = vmatprep.mubr.bf16.mxu1 %v2576_v19  ;;  %v6653_v52 = vld [vmem:[%s8864_s3 + $0x7e8] ss:$12 sps:$4 sm:$0xff]   ;;  %v6628_v19 = vld [vmem:[%s8864_s3 + $0x6ac] ss:$12 sps:$4 sm:$0xff]  }
 0x217   :  { %4932 = vmatmul.mubr.bf16.vlgmr.msra.gmra.mrb[28].mxu1 %v8485_v17 }
 0x218   :  { %4664 = vmatpush1.bf16.msra.mxu0 %v6565_v18  ;;  %5778 = vmatpush3.bf16.msra.mxu1 %v6569_v10  ;;  %v6623_v18 = vld [vmem:[%s8864_s3 + $0x690] ss:$12 sps:$4 sm:$0xff]   ;;  %v6663_v10 = vld [vmem:[%s8864_s3 + $0x818] ss:$12 sps:$4 sm:$0xff]  }
 0x219   :  { %4972 = vmatprep.mubr.bf16.mxu1 %v8272_v15  ;;  %4665 = vmatprep.subr.bf16.mxu0 %v6572_v6  ;;  %v6667_v6 = vld [vmem:[%s8864_s3 + $0x8f0] ss:$12 sps:$4 sm:$0xff]  }
 0x21a   :  { %5779 = vmatprep.subr.bf16.mxu1 %v6573_v20  ;;  %v6626_v20 = vld [vmem:[%s8864_s3 + $0x6a8] ss:$12 sps:$4 sm:$0xff]  }
 0x21c   :  { %4666 = vmatpush1.bf16.msra.mxu0 %v6570_v21  ;;  %5780 = vmatpush3.bf16.msra.mxu1 %v6574_v22  ;;  %v6631_v21 = vld [vmem:[%s8864_s3 + $0x6c4] ss:$12 sps:$4 sm:$0xff]  }
 0x21d   :  { %4667 = vmatprep.subr.bf16.mxu0 %v6577_v23  ;;  %5781 = vmatprep.subr.bf16.mxu1 %v6578_v24  ;;  %v6668_v22 = vld [vmem:[%s8864_s3 + $0x830] ss:$12 sps:$4 sm:$0xff]   ;;  %v364_v23 = vrot.slane %v8137_v25, %v8059_v49  ;;  %v368_v24 = vrot.slane %v8137_v25, %v335_v53  ;;  %v6634_v25 = vld [vmem:[%s8864_s3 + $0x6d8] ss:$12 sps:$4 sm:$0xff]  }
 0x220   :  { %4668 = vmatpush1.bf16.msra.mxu0 %v6575_v26  ;;  %5782 = vmatpush3.bf16.msra.mxu1 %v6579_v27  ;;  %v6629_v26 = vld [vmem:[%s8864_s3 + $0x6c0] ss:$12 sps:$4 sm:$0xff]  }
 0x221   :  { %4669 = vmatprep.subr.bf16.mxu0 %v6582_v28  ;;  %5783 = vmatprep.subr.bf16.mxu1 %v6583_v29  ;;  %v6636_v28 = vld [vmem:[%s8864_s3 + $0x6dc] ss:$12 sps:$4 sm:$0xff]  }
 0x224   :  { %4670 = vmatpush1.bf16.msra.mxu0 %v6580_v30  ;;  %5784 = vmatpush3.bf16.msra.mxu1 %v6584_v31 }
 0x225   :  { %4671 = vmatprep.subr.bf16.mxu0 %v6587_v32  ;;  %5785 = vmatprep.subr.bf16.mxu1 %v6588_v33 }
 0x228   :  { %4672 = vmatpush1.bf16.msra.mxu0 %v6585_v9  ;;  %5786 = vmatpush3.bf16.msra.mxu1 %v6589_v35 }
 0x229   :  { %4673 = vmatprep.subr.bf16.mxu0 %v6592_v37  ;;  %5787 = vmatprep.subr.bf16.mxu1 %v6593_v34  ;;  %v6641_v37 = vld [vmem:[%s8864_s3 + $0x6f4] ss:$12 sps:$4 sm:$0xff]  }
 0x22c   :  { %4674 = vmatpush1.bf16.msra.mxu0 %v6590_v13  ;;  %5788 = vmatpush3.bf16.msra.mxu1 %v6594_v38 }
 0x22d   :  { %4675 = vmatprep.subr.bf16.mxu0 %v6597_v5  ;;  %5789 = vmatprep.subr.bf16.mxu1 %v6598_v40 }
 0x230   :  { %4676 = vmatpush1.bf16.msra.mxu0 %v6595_v46  ;;  %5790 = vmatpush3.bf16.msra.mxu1 %v6599_v47  ;;  %v6639_v47 = vld [vmem:[%s8864_s3 + $0x6f0] ss:$12 sps:$4 sm:$0xff]  }
 0x231   :  { %4677 = vmatprep.subr.bf16.mxu0 %v6602_v48  ;;  %5791 = vmatprep.subr.bf16.mxu1 %v6603_v50 }
 0x234   :  { %4678 = vmatpush1.bf16.msra.mxu0 %v6600_v51  ;;  %5792 = vmatpush3.bf16.msra.mxu1 %v6604_v36  ;;  %v6646_v51 = vld [vmem:[%s8864_s3 + $0x70c] ss:$12 sps:$4 sm:$0xff]  }
 0x235   :  { %4690 = vmatprep.subr.bf16.mxu0 %v6607_v7  ;;  %5799 = vmatprep.subr.bf16.mxu1 %v6632_v57 }
 0x237   :  { %4680 = vmatmul.mubr.bf16.vlgmr.msra.gmra.mrb[8].mxu0 %v8485_v17  ;;  %4973 = vmatmul.mubr.bf16.vlgmr.msra.gmra.mrb[32].mxu1 %v8267_v14  ;;  %v6662_v17 = vld [vmem:[%s8864_s3 + $0x8d8] ss:$12 sps:$4 sm:$0xff]  }
 0x238   :  { %4691 = vmatpush1.bf16.msra.mxu0 %v6605_v59  ;;  %4722 = vmatprep.mubr.bf16.mxu0 %v8272_v15  ;;  %v6611_v15 = vld [vmem:[%s8864_s3 + $0x630] ss:$12 sps:$4 sm:$0xff]  }
 0x239   :  { %4692 = vmatprep.subr.bf16.mxu0 %v6610_v60  ;;  %5800 = vmatpush3.bf16.msra.mxu1 %v6633_v42 }
 0x23a   :  { %5801 = vmatprep.subr.bf16.mxu1 %v6637_v61  ;;  %v6644_v61 = vld [vmem:[%s8864_s3 + $0x708] ss:$12 sps:$4 sm:$0xff]  }
 0x23c   :  { %4693 = vmatpush1.bf16.msra.mxu0 %v6608_v63 }
 0x23d   :  { %4694 = vmatprep.subr.bf16.mxu0 %v6613_v45  ;;  %5802 = vmatpush3.bf16.msra.mxu1 %v6638_v43  ;;  %v6651_v43 = vld [vmem:[%s8864_s3 + $0x724] ss:$12 sps:$4 sm:$0xff]  }
 0x23e   :  { %5803 = vmatprep.subr.bf16.mxu1 %v6642_v8 }
 0x240   :  { %4695 = vmatpush1.bf16.msra.mxu0 %v6611_v15 }
 0x241   :  { %4696 = vmatprep.subr.bf16.mxu0 %v6616_v62  ;;  %5804 = vmatpush3.bf16.msra.mxu1 %v6643_v56  ;;  %v6649_v62 = vld [vmem:[%s8864_s3 + $0x720] ss:$12 sps:$4 sm:$0xff]   ;;  %v6656_v56 = vld [vmem:[%s8864_s3 + $0x73c] ss:$12 sps:$4 sm:$0xff]  }
 0x242   :  { %5805 = vmatprep.subr.bf16.mxu1 %v6647_v16  ;;  %v6654_v16 = vld [vmem:[%s8864_s3 + $0x738] ss:$12 sps:$4 sm:$0xff]  }
 0x244   :  { %4697 = vmatpush1.bf16.msra.mxu0 %v6614_v1  ;;  %v6661_v1 = vld [vmem:[%s8864_s3 + $0x754] ss:$12 sps:$4 sm:$0xff]  }
 0x245   :  { %4698 = vmatprep.subr.bf16.mxu0 %v6619_v58  ;;  %5806 = vmatpush3.bf16.msra.mxu1 %v6648_v0 }
 0x246   :  { %5807 = vmatprep.subr.bf16.mxu1 %v6652_v3  ;;  %v6659_v3 = vld [vmem:[%s8864_s3 + $0x750] ss:$12 sps:$4 sm:$0xff]  }
 0x248   :  { %4699 = vmatpush1.bf16.msra.mxu0 %v6617_v4 }
 0x249   :  { %4700 = vmatprep.subr.bf16.mxu0 %v6622_v55  ;;  %5808 = vmatpush3.bf16.msra.mxu1 %v6653_v52 }
 0x24a   :  { %5809 = vmatprep.subr.bf16.mxu1 %v6657_v11  ;;  %v6666_v11 = vld [vmem:[%s8864_s3 + $0x76c] ss:$12 sps:$4 sm:$0xff]  }
 0x24c   :  { %4701 = vmatpush1.bf16.msra.mxu0 %v6620_v12 }
 0x24d   :  { %4702 = vmatprep.subr.bf16.mxu0 %v6625_v54  ;;  %5810 = vmatpush3.bf16.msra.mxu1 %v6658_v2 }
 0x24e   :  { %5811 = vmatprep.subr.bf16.mxu1 %v6662_v17 }
 0x250   :  { %4703 = vmatpush1.bf16.msra.mxu0 %v6623_v18 }
 0x251   :  { %4704 = vmatprep.subr.bf16.mxu0 %v6628_v19  ;;  %5812 = vmatpush3.bf16.msra.mxu1 %v6663_v10 }
 0x252   :  { %5813 = vmatprep.subr.bf16.mxu1 %v6667_v6  ;;  %v6664_v6 = vld [vmem:[%s8864_s3 + $0x768] ss:$12 sps:$4 sm:$0xff]  }
 0x254   :  { %4705 = vmatpush1.bf16.msra.mxu0 %v6626_v20 }
 0x255   :  { %v2344_v27 = vpop.f32.mrb[12].mxu1  ;;  %4706 = vmatprep.subr.bf16.mxu0 %v6631_v21  ;;  %5814 = vmatpush3.bf16.msra.mxu1 %v6668_v22  ;;  %v6671_v22 = vld [vmem:[%s8864_s3 + $0x784] ss:$12 sps:$4 sm:$0xff]  }
 0x256   :  { %v5841_v29 = vadd.f32 %v2344_v27, %v364_v23  ;;  %v2346_v30 = vpop.f32.mrb[13].mxu1  ;;  %v6669_v27 = vld [vmem:[%s8864_s3 + $0x780] ss:$12 sps:$4 sm:$0xff]  }
 0x257   :  { %v5842_v31 = vadd.f32 %v2346_v30, %v368_v24  ;;  %v2348_v32 = vpop.f32.mrb[14].mxu1  ;;  %v6674_v30 = vld [vmem:[%s8864_s3 + $0x79c] ss:$12 sps:$4 sm:$0xff]  }
 0x258   :  { %v2387_v33 = vmul.f32 %v5841_v29, %v5841_v29  ;;  %v5843_v39 = vadd.f32 %v2348_v32, %v364_v23  ;;  %4707 = vmatpush1.bf16.msra.mxu0 %v6629_v26  ;;  %v2350_v53 = vpop.f32.mrb[15].mxu1  ;;  %v2363_v58 = vmul.f32 0.5, %v5841_v29 }
 0x259   :  { %v2388_v9 = vmul.f32 %v5842_v31, %v5842_v31  ;;  %v5844_v35 = vadd.f32 %v2350_v53, %v368_v24  ;;  %4708 = vmatprep.subr.bf16.mxu0 %v6636_v28  ;;  %v2364_v4 = vmul.f32 0.5, %v5842_v31  ;;  %v6672_v53 = vld [vmem:[%s8864_s3 + $0x798] ss:$12 sps:$4 sm:$0xff]  }
 0x25a   :  { %v2411_v34 = vmul.f32 %v5841_v29, %v2387_v33  ;;  %v2399_v13 = vmul.f32 %v5843_v39, %v5843_v39  ;;  %v2375_v52 = vmul.f32 0.5, %v5843_v39 }
 0x25b   :  { %v2412_v38 = vmul.f32 %v5842_v31, %v2388_v9  ;;  %v2400_v5 = vmul.f32 %v5844_v35, %v5844_v35  ;;  %v2376_v2 = vmul.f32 0.5, %v5844_v35  ;;  %v6677_v9 = vld [vmem:[%s8864_s3 + $0x7b4] ss:$12 sps:$4 sm:$0xff]  }
 0x25c   :  { %v2435_v40 = vmul.f32 0.044715, %v2411_v34  ;;  %v2423_v46 = vmul.f32 %v5843_v39, %v2399_v13  ;;  %4709 = vmatpush1.bf16.msra.mxu0 %v6634_v25  ;;  %v6683_v34 = vld [vmem:[%s8864_s3 + $0x7e4] ss:$12 sps:$4 sm:$0xff]   ;;  %v6681_v13 = vld [vmem:[%s8864_s3 + $0x7e0] ss:$12 sps:$4 sm:$0xff]  }
 0x25d   :  { %v2436_v48 = vmul.f32 0.044715, %v2412_v38  ;;  %v2424_v50 = vmul.f32 %v5844_v35, %v2400_v5  ;;  %4710 = vmatprep.subr.bf16.mxu0 %v6641_v37  ;;  %v6678_v37 = vld [vmem:[%s8864_s3 + $0x7c8] ss:$12 sps:$4 sm:$0xff]   ;;  %v6684_v5 = vld [vmem:[%s8864_s3 + $0x7f8] ss:$12 sps:$4 sm:$0xff]  }
 0x25e   :  { %v2459_v36 = vadd.f32 %v5841_v29, %v2435_v40  ;;  %v2447_v7 = vmul.f32 0.044715, %v2423_v46  ;;  %v6686_v38 = vld [vmem:[%s8864_s3 + $0x7fc] ss:$12 sps:$4 sm:$0xff]   ;;  %v6689_v40 = vld [vmem:[%s8864_s3 + $0x814] ss:$12 sps:$4 sm:$0xff]  }
 0x25f   :  { %v2460_v57 = vadd.f32 %v5842_v31, %v2436_v48  ;;  %v2448_v59 = vmul.f32 0.044715, %v2424_v50  ;;  %v6687_v46 = vld [vmem:[%s8864_s3 + $0x810] ss:$12 sps:$4 sm:$0xff]   ;;  %v8783_v48 = vld [vmem:[%s8865_s4] sm:$0x7] }
 0x260   :  { %v2483_v60 = vmul.f32 0.7978846, %v2459_v36  ;;  %v2471_v42 = vadd.f32 %v5843_v39, %v2447_v7  ;;  %4711 = vmatpush1.bf16.msra.mxu0 %v6639_v47  ;;  %v6692_v47 = vld [vmem:[%s8864_s3 + $0x82c] ss:$12 sps:$4 sm:$0xff]   ;;  %v6690_v50 = vld [vmem:[%s8864_s3 + $0x828] ss:$12 sps:$4 sm:$0xff]   ;;  %v2978_v36 = vrot.slane %v8783_v48, %v8059_v49 }
 0x261   :  { %v2484_v63 = vmul.f32 0.7978846, %v2460_v57  ;;  %v2472_v45 = vadd.f32 %v5844_v35, %v2448_v59  ;;  %4712 = vmatprep.subr.bf16.mxu0 %v6646_v51  ;;  %v6680_v35 = vld [vmem:[%s8864_s3 + $0x7cc] ss:$12 sps:$4 sm:$0xff]   ;;  %v6695_v51 = vld [vmem:[%s8864_s3 + $0x844] ss:$12 sps:$4 sm:$0xff]  }
 0x262   :  { %6757 = vtanh.f32 %v2483_v60  ;;  %v2495_v8 = vmul.f32 0.7978846, %v2471_v42  ;;  %v6693_v7 = vld [vmem:[%s8864_s3 + $0x840] ss:$12 sps:$4 sm:$0xff]   ;;  %v6698_v59 = vld [vmem:[%s8864_s3 + $0x85c] ss:$12 sps:$4 sm:$0xff]  }
 0x263   :  { %6759 = vtanh.f32 %v2484_v63  ;;  %v2496_v15 = vmul.f32 0.7978846, %v2472_v45 }
 0x264   :  { %6761 = vtanh.f32 %v2495_v8  ;;  %4713 = vmatpush1.bf16.msra.mxu0 %v6644_v61 }
 0x265   :  { %6763 = vtanh.f32 %v2496_v15  ;;  %4714 = vmatprep.subr.bf16.mxu0 %v6651_v43  ;;  %v6696_v43 = vld [vmem:[%s8864_s3 + $0x858] ss:$12 sps:$4 sm:$0xff]  }
 0x268   :  { %4715 = vmatpush1.bf16.msra.mxu0 %v6649_v62 }
 0x269   :  { %4716 = vmatprep.subr.bf16.mxu0 %v6656_v56  ;;  %v6701_v56 = vld [vmem:[%s8864_s3 + $0x874] ss:$12 sps:$4 sm:$0xff]  }
 0x26c   :  { %v6758_v0 = vpop.eup %6757  ;;  %4717 = vmatpush1.bf16.msra.mxu0 %v6654_v16 }
 0x26d   :  { %v6760_v55 = vpop.eup %6759  ;;  %4718 = vmatprep.subr.bf16.mxu0 %v6661_v1  ;;  %v2531_v12 = vadd.f32 1.0, %v6758_v0  ;;  %v6699_v1 = vld [vmem:[%s8864_s3 + $0x870] ss:$12 sps:$4 sm:$0xff]   ;;  %v6702_v0 = vld [vmem:[%s8864_s3 + $0x888] ss:$12 sps:$4 sm:$0xff]  }
 0x26e   :  { %v6762_v54 = vpop.eup %6761  ;;  %v2532_v17 = vadd.f32 1.0, %v6760_v55  ;;  %v6710_v55 = vld [vmem:[%s8864_s3 + $0x8bc] ss:$12 sps:$4 sm:$0xff]  }
 0x26f   :  { %v6764_v18 = vpop.eup %6763  ;;  %v2543_v19 = vadd.f32 1.0, %v6762_v54  ;;  %v2555_v10 = vmul.f32 %v2531_v12, %v2363_v58  ;;  %v6704_v58 = vld [vmem:[%s8864_s3 + $0x88c] ss:$12 sps:$4 sm:$0xff]   ;;  %v6711_v12 = vld [vmem:[%s8864_s3 + $0x8d0] ss:$12 sps:$4 sm:$0xff]  }
 0x270   :  { %4719 = vmatpush1.bf16.msra.mxu0 %v6659_v3  ;;  %v2544_v20 = vadd.f32 1.0, %v6764_v18  ;;  %v2556_v21 = vmul.f32 %v2532_v17, %v2364_v4  ;;  %v6707_v3 = vld [vmem:[%s8864_s3 + $0x8a4] ss:$12 sps:$4 sm:$0xff]   ;;  %v6705_v4 = vld [vmem:[%s8864_s3 + $0x8a0] ss:$12 sps:$4 sm:$0xff]  }
 0x271   :  { %4720 = vmatprep.subr.bf16.mxu0 %v6666_v11  ;;  %v2567_v23 = vmul.f32 %v2543_v19, %v2375_v52  ;;  %v6708_v52 = vld [vmem:[%s8864_s3 + $0x8b8] ss:$12 sps:$4 sm:$0xff]   ;;  %v6713_v11 = vld [vmem:[%s8864_s3 + $0x8d4] ss:$12 sps:$4 sm:$0xff]  }
 0x272   :  { %v2568_v24 = vmul.f32 %v2544_v20, %v2376_v2  ;;  %v6716_v54 = vld [vmem:[%s8864_s3 + $0x8ec] ss:$12 sps:$4 sm:$0xff]   ;;  %v6714_v2 = vld [vmem:[%s8864_s3 + $0x8e8] ss:$12 sps:$4 sm:$0xff]  }
 0x273   :  { %v8734_v26 = vpack.c.bf16 %v2567_v23, %v2555_v10 }
 0x274   :  { %4721 = vmatpush1.bf16.msra.mxu0 %v6664_v6  ;;  %v2580_v28 = vpack.c.bf16 %v2568_v24, %v2556_v21 }
 0x275   :  { %v5705_v29 = vpop.f32.mrb[16].mxu1  ;;  %4733 = vmatprep.subr.bf16.mxu0 %v6671_v22 }
 0x276   :  { %v5706_v31 = vpop.f32.mrb[17].mxu1  ;;  %5013 = vmatprep.mubr.bf16.mxu1 %v2580_v28 }
 0x277   :  { %4723 = vmatmul.mubr.bf16.vlgmr.msra.gmra.mrb[8].mxu0 %v8267_v14  ;;  %v5707_v32 = vadd.f32 %v5706_v31, %v5705_v29  ;;  %v5708_v33 = vpop.f32.mrb[18].mxu1  ;;  %5014 = vmatmul.mubr.bf16.vlgmr.msra.gmra.mrb[36].mxu1 %v8734_v26  ;;  %v6675_v14 = vld [vmem:[%s8864_s3 + $0x7b0] ss:$12 sps:$4 sm:$0xff]  }
 0x278   :  { %4734 = vmatpush1.bf16.msra.mxu0 %v6669_v27  ;;  %v5709_v39 = vpop.f32.mrb[19].mxu1  ;;  %4765 = vmatprep.mubr.bf16.mxu0 %v2580_v28 }
 0x279   :  { %v5710_v25 = vadd.f32 %v5709_v39, %v5708_v33  ;;  %4735 = vmatprep.subr.bf16.mxu0 %v6674_v30  ;;  %v4811_v42 = vadd.f32 %v5707_v32, %v2978_v36 }
 0x27b   :  { %v4814_v8 = vadd.f32 %v5710_v25, %v2978_v36 }
 0x27c   :  { %4736 = vmatpush1.bf16.msra.mxu0 %v6672_v53 }
 0x27d   :  { %4737 = vmatprep.subr.bf16.mxu0 %v6677_v9 }
 0x280   :  { %4738 = vmatpush1.bf16.msra.mxu0 %v6675_v14 }
 0x281   :  { %4739 = vmatprep.subr.bf16.mxu0 %v6680_v35 }
 0x284   :  { %4740 = vmatpush1.bf16.msra.mxu0 %v6678_v37 }
 0x285   :  { %4741 = vmatprep.subr.bf16.mxu0 %v6683_v34 }
 0x288   :  { %4742 = vmatpush1.bf16.msra.mxu0 %v6681_v13 }
 0x289   :  { %4743 = vmatprep.subr.bf16.mxu0 %v6686_v38 }
 0x28c   :  { %4744 = vmatpush1.bf16.msra.mxu0 %v6684_v5 }
 0x28d   :  { %4745 = vmatprep.subr.bf16.mxu0 %v6689_v40 }
 0x290   :  { %4746 = vmatpush1.bf16.msra.mxu0 %v6687_v46 }
 0x291   :  { %4747 = vmatprep.subr.bf16.mxu0 %v6692_v47 }
 0x294   :  { %4748 = vmatpush1.bf16.msra.mxu0 %v6690_v50  ;;  %v2970_v50 = vrot.slane %v8783_v48, %v7736_v41 }
 0x295   :  { %v5727_v57 = vpop.f32.mrb[20].mxu1  ;;  %4749 = vmatprep.subr.bf16.mxu0 %v6695_v51  ;;  %v2974_v51 = vrot.slane %v8783_v48, %v7747_v44 }
 0x296   :  { %v5728_v60 = vpop.f32.mrb[21].mxu1 }
 0x297   :  { %v5729_v61 = vadd.f32 %v5728_v60, %v5727_v57  ;;  %v5730_v63 = vpop.f32.mrb[22].mxu1 }
 0x298   :  { %4750 = vmatpush1.bf16.msra.mxu0 %v6693_v7  ;;  %v5731_v45 = vpop.f32.mrb[23].mxu1 }
 0x299   :  { %v4852_v15 = vadd.f32 %v5729_v61, %v4811_v42  ;;  %v5732_v62 = vadd.f32 %v5731_v45, %v5730_v63  ;;  %4751 = vmatprep.subr.bf16.mxu0 %v6698_v59 }
 0x29b   :  { %v4855_v16 = vadd.f32 %v5732_v62, %v4814_v8 }
 0x29c   :  { %4752 = vmatpush1.bf16.msra.mxu0 %v6696_v43 }
 0x29d   :  { %4753 = vmatprep.subr.bf16.mxu0 %v6701_v56 }
 0x2a0   :  { %4754 = vmatpush1.bf16.msra.mxu0 %v6699_v1 }
 0x2a1   :  { %4755 = vmatprep.subr.bf16.mxu0 %v6704_v58 }
 0x2a4   :  { %4756 = vmatpush1.bf16.msra.mxu0 %v6702_v0 }
 0x2a5   :  { %4757 = vmatprep.subr.bf16.mxu0 %v6707_v3 }
 0x2a8   :  { %4758 = vmatpush1.bf16.msra.mxu0 %v6705_v4 }
 0x2a9   :  { %4759 = vmatprep.subr.bf16.mxu0 %v6710_v55 }
 0x2ac   :  { %4760 = vmatpush1.bf16.msra.mxu0 %v6708_v52 }
 0x2ad   :  { %4761 = vmatprep.subr.bf16.mxu0 %v6713_v11 }
 0x2b0   :  { %4762 = vmatpush1.bf16.msra.mxu0 %v6711_v12 }
 0x2b1   :  { %4763 = vmatprep.subr.bf16.mxu0 %v6716_v54 }
 0x2b4   :  { %4764 = vmatpush1.bf16.msra.mxu0 %v6714_v2 }
 0x2b5   :  { %v5749_v17 = vpop.f32.mrb[24].mxu1 }
 0x2b6   :  { %v5750_v18 = vpop.f32.mrb[25].mxu1 }
 0x2b7   :  { %4766 = vmatmul.mubr.bf16.vlgmr.msra.gmra.mrb[8].mxu0 %v8734_v26  ;;  %v5751_v19 = vadd.f32 %v5750_v18, %v5749_v17  ;;  %v5752_v10 = vpop.f32.mrb[26].mxu1 }
 0x2b8   :  { %v5753_v6 = vpop.f32.mrb[27].mxu1 }
 0x2b9   :  { %v4893_v20 = vadd.f32 %v5751_v19, %v4852_v15  ;;  %v5754_v21 = vadd.f32 %v5753_v6, %v5752_v10 }
 0x2bb   :  { %v4896_v22 = vadd.f32 %v5754_v21, %v4855_v16 }
 0x2ea   :  { %v5771_v23 = vpop.f32.mrb[28].mxu1 }
 0x2eb   :  { %v5772_v24 = vpop.f32.mrb[29].mxu1 }
 0x2ec   :  { %v5773_v27 = vadd.f32 %v5772_v24, %v5771_v23  ;;  %v5774_v28 = vpop.f32.mrb[30].mxu1 }
 0x2ed   :  { %v5775_v29 = vpop.f32.mrb[31].mxu1 }
 0x2ee   :  { %v4934_v30 = vadd.f32 %v5773_v27, %v4893_v20  ;;  %v5776_v31 = vadd.f32 %v5775_v29, %v5774_v28  ;;  %v5065_v28 = vld [vmem:[%s8866_s5] sm:$0x7]  ;;  %s6773_s5 = scalar_lea.vmem %s5100_s14, 768 }
 0x2ef   :  { %v5070_v29 = vrot.slane %v5065_v28, %v7736_v41  ;;  %p6774_p0 = scmp.ne.s32.totalorder %s5100_s14, %s6773_s5  ;;  %p6779_p2 = scmp.lt.s32.totalorder %s6773_s5, %s6773_s5 }
 0x2f0   :  { %v4937_v32 = vadd.f32 %v5776_v31, %v4896_v22  ;;  %v5078_v31 = vrot.slane %v5065_v28, %v8059_v49 }
 0x2f1   :  { %p6780_p3 = por %p6779_p2, %p6778_p1 }
 0x2f3   :  { %p6781_p4 = pnand %p6780_p3, %p6774_p0 }
 0x30a   :  { %v5793_v33 = vpop.f32.mrb[32].mxu1 }
 0x30b   :  { %v5794_v39 = vpop.f32.mrb[33].mxu1 }
 0x30c   :  { %v5795_v53 = vadd.f32 %v5794_v39, %v5793_v33  ;;  %v5796_v25 = vpop.f32.mrb[34].mxu1 }
 0x30d   :  { %v5797_v9 = vpop.f32.mrb[35].mxu1 }
 0x30e   :  { %v4975_v26 = vadd.f32 %v5795_v53, %v4934_v30  ;;  %v5798_v14 = vadd.f32 %v5797_v9, %v5796_v25  ;;  %v5074_v30 = vrot.slane %v5065_v28, %v7747_v44 }
 0x310   :  { %v4978_v35 = vadd.f32 %v5798_v14, %v4937_v32 }
 0x34a   :  { %v5815_v37 = vpop.f32.mrb[36].mxu1 }
 0x34b   :  { %v5816_v34 = vpop.f32.mrb[37].mxu1 }
 0x34c   :  { %v5817_v13 = vadd.f32 %v5816_v34, %v5815_v37  ;;  %v5818_v38 = vpop.f32.mrb[38].mxu1 }
 0x34d   :  { %v5819_v5 = vpop.f32.mrb[39].mxu1 }
 0x34e   :  { %v5820_v40 = vadd.f32 %v5819_v5, %v5818_v38  ;;  %v5016_v46 = vadd.f32 %v5817_v13, %v4975_v26 }
 0x350   :  { %v5019_v47 = vadd.f32 %v5820_v40, %v4978_v35 }
 0x38a   :  { %v4767_v36 = vpop.f32.mrb[8].mxu0 }
 0x38b   :  { %v5845_v7 = vadd.f32 %v4767_v36, %v2970_v50  ;;  %v4769_v57 = vpop.f32.mrb[9].mxu0 }
 0x38c   :  { %v5846_v59 = vadd.f32 %v4769_v57, %v2974_v51  ;;  %v4771_v60 = vpop.f32.mrb[10].mxu0 }
 0x38d   :  { %v5847_v42 = vadd.f32 %v4771_v60, %v2970_v50  ;;  %v4773_v61 = vpop.f32.mrb[11].mxu0 }
 0x38e   :  { %v5848_v63 = vadd.f32 %v4773_v61, %v2974_v51  ;;  %v5022_v45 = vadd.f32 %v5846_v59, %v5845_v7 }
 0x390   :  { %v5026_v43 = vadd.f32 %v5848_v63, %v5847_v42  ;;  %v5023_v8 = vadd.f32 %v5022_v45, %v5016_v46 }
 0x392   :  { %5024 = vadd.xlane.f32.xlu0 %v5023_v8  ;;  %v5027_v15 = vadd.f32 %v5026_v43, %v5019_v47 }
 0x396   :  { %5028 = vadd.xlane.f32.xlu0 %v5027_v15 }
 0x41f   :  { %v5025_v62 = vpop.xlane.xlu0 %5024 }
 0x420   :  { %v5031_v56 = vmul.f32 0.0026041667, %v5025_v62 }
 0x422   :  { %v5033_v16 = vsub.f32 %v5845_v7, %v5031_v56  ;;  %v5034_v1 = vsub.f32 %v5846_v59, %v5031_v56  ;;  %v5035_v58 = vsub.f32 %v5016_v46, %v5031_v56 }
 0x423   :  { %v5029_v48 = vpop.xlane.xlu0 %5028 }
 0x424   :  { %v5032_v0 = vmul.f32 0.0026041667, %v5029_v48  ;;  %v5039_v3 = vmul.f32 %v5033_v16, %v5033_v16  ;;  %v5040_v4 = vmul.f32 %v5034_v1, %v5034_v1  ;;  %v5041_v55 = vmul.f32 %v5035_v58, %v5035_v58 }
 0x426   :  { %v5036_v52 = vsub.f32 %v5847_v42, %v5032_v0  ;;  %v5037_v11 = vsub.f32 %v5848_v63, %v5032_v0  ;;  %v5038_v12 = vsub.f32 %v5019_v47, %v5032_v0  ;;  %v5045_v54 = vadd.f32 %v5040_v4, %v5039_v3 }
 0x428   :  { %v5046_v2 = vadd.f32 %v5045_v54, %v5041_v55  ;;  %v5042_v17 = vmul.f32 %v5036_v52, %v5036_v52  ;;  %v5043_v18 = vmul.f32 %v5037_v11, %v5037_v11  ;;  %v5044_v19 = vmul.f32 %v5038_v12, %v5038_v12 }
 0x42a   :  { %5047 = vadd.xlane.f32.xlu1 %v5046_v2  ;;  %v5049_v10 = vadd.f32 %v5043_v18, %v5042_v17 }
 0x42c   :  { %v5050_v6 = vadd.f32 %v5049_v10, %v5044_v19 }
 0x42e   :  { %5051 = vadd.xlane.f32.xlu1 %v5050_v6 }
 0x4b7   :  { %v5048_v20 = vpop.xlane.xlu1 %5047 }
 0x4b8   :  { %v5053_v21 = vmul.f32 0.0026041667, %v5048_v20 }
 0x4ba   :  { %v5055_v22 = vadd.f32 1e-05, %v5053_v21 }
 0x4bb   :  { %v5052_v23 = vpop.xlane.xlu1 %5051 }
 0x4bc   :  { %6765 = vrsqrt.f32 %v5055_v22  ;;  %v5054_v24 = vmul.f32 0.0026041667, %v5052_v23 }
 0x4be   :  { %v5056_v27 = vadd.f32 1e-05, %v5054_v24 }
 0x4c0   :  { %6767 = vrsqrt.f32 %v5056_v27 }
 0x4c6   :  { %v6766_v32 = vpop.eup %6765 }
 0x4c7   :  { %v5059_v33 = vmul.f32 %v6766_v32, %v5033_v16  ;;  %v5060_v39 = vmul.f32 %v6766_v32, %v5034_v1  ;;  %v5061_v53 = vmul.f32 %v6766_v32, %v5035_v58 }
 0x4c9   :  { %v5082_v25 = vmul.f32 %v5070_v29, %v5059_v33  ;;  %v5083_v9 = vmul.f32 %v5074_v30, %v5060_v39  ;;  %v5084_v26 = vmul.f32 %v5078_v31, %v5061_v53 }
 0x4ca   :  { %v6768_v14 = vpop.eup %6767 }
 0x4cb   :  { %v5062_v35 = vmul.f32 %v6768_v14, %v5036_v52  ;;  %v5063_v37 = vmul.f32 %v6768_v14, %v5037_v11  ;;  %v5064_v34 = vmul.f32 %v6768_v14, %v5038_v12  ;;  %5088 = vst [vmem:[#allocation2] sm:$0xff] %v5082_v25  ;;  %5089 = vst [vmem:[#allocation2 + $0x8] sm:$0xff] %v5083_v9 }
 0x4cc   :  { %5090 = vst [vmem:[#allocation2 + $0x10] sm:$0xff] %v5084_v26 }
 0x4cd   :  { %v5085_v41 = vmul.f32 %v5070_v29, %v5062_v35  ;;  %v5086_v44 = vmul.f32 %v5074_v30, %v5063_v37  ;;  %v5087_v49 = vmul.f32 %v5078_v31, %v5064_v34 }
 0x4cf   :  { %5091 = vst [vmem:[#allocation2 + $0x18] sm:$0xff] %v5085_v41  ;;  %5092 = vst [vmem:[#allocation2 + $0x20] sm:$0xff] %v5086_v44 }
 0x4d0   :  { %5093 = vst [vmem:[#allocation2 + $0x28] sm:$0xff] %v5087_v49 }
 0x4d1   :  { %6784 = shalt.err (!%p6781_p4)
}
 0x4d2   :  { %s6785_s16 = scalar_lea.hbm %s8867_s6, 768 }
 0x4d3   :  { %p6786_p5 = scmp.ne.s32.totalorder %s8867_s6, %s6785_s16  ;;  %p6789_p6 = scmp.lt.u32.totalorder %s6785_s16, %s8867_s6 }
 0x4d5   :  { %p6791_p7 = pnand %p6789_p6, %p6786_p5 }
 0x4d7   :  { %6794 = shalt.err (!%p6791_p7)
}
 0x4d8   :  { %s6799_s21 = smov 384   ;;  %s6800_s22 = smov 24  }
 0x4d9   :  { %5105 = dma.vmem_to_hbm [thread:$0]  %s5100_s14, 768, %s8867_s6, [#allocation3], %s6799_s21, %s6799_s21, %s6800_s22  }
 0x4da   :  { %6795 = dma.done.wait [#allocation3], 768  }
 0x4db   :  { %6796 = vsyncadd [#allocation3], 4294966528 }
 0x4dc   :  { %5109 = vsyncpa [#allocation3], 1 }

</bundles_post_ra>
